<compile_context>
chip_gen: v7x
topology: tpu7x:2x2x1
jax: 0.10.0
libtpu: 0.0.40
codegen_flags: <defaults>
</compile_context>

<pallas_src>
import functools
import math

import jax
import jax.numpy as jnp
from jax.experimental import pallas as pl
from jax.experimental.pallas import tpu as pltpu


# ----------------------------------------------------------------------------
# Pallas kernel: (Cout, Kcin) @ (Kcin, tile_m) + bias [+ ReLU], lane-dense out
# ----------------------------------------------------------------------------
def _conv_mm_kernel(x_ref, w_ref, b_ref, o_ref, *, relu):
    # Single fused-contraction matmul on the MXU (bf16 x bf16 -> f32 accumulate).
    acc = jnp.dot(w_ref[...], x_ref[0], preferred_element_type=jnp.float32)
    acc = acc + b_ref[...]                      # (Cout, 1) broadcast along lanes
    if relu:
        acc = jnp.maximum(acc, 0.0)
    o_ref[0] = acc.astype(o_ref.dtype)


def _round_up(v, m):
    return -(-v // m) * m


def _pick_tile_m(m, kcinp, cout, batch, *, budget_bytes=12 * 1024 * 1024,
                 max_tile=2048):
    """Largest lane-aligned M tile whose double-buffered blocks fit the budget."""
    # 2x-buffered bf16 input block + 2x-buffered f32 output block, per column.
    per_col = 2 * (kcinp * 2) + 2 * (cout * 4)
    tm = max_tile
    while tm > 128 and tm * per_col > budget_bytes:
        tm //= 2
    tm = min(tm, _round_up(m, 128))
    # v7x has 2 TensorCores: keep at least 2 tiles on the parallel grid.
    while batch * (_round_up(m, tm) // tm) < 2 and tm > 128:
        tm = max(128, (tm // 2) // 128 * 128)
    return max(tm, 128)


def conv3d(x, w, b, *, relu=False):
    """3-D conv, stride 1, padding k//2, as one fused Pallas matmul per tile.

    x: (B, Cin, D, H, W) f32    w: (Cout, Cin, k, k, k) f32    b: (Cout,) f32
    returns (B, Cout, D, H, W) f32
    """
    B, Cin, D, H, W = x.shape
    Cout, _, kd, kh, kw = w.shape
    pad = kd // 2
    M = D * H * W
    K = kd * kh * kw
    Kcin = K * Cin

    # bf16 at the kernel boundary (f32 accumulation inside the kernel).
    xb = x.astype(jnp.bfloat16)
    if pad:
        xb = jnp.pad(xb, ((0, 0), (0, 0), (pad, pad), (pad, pad), (pad, pad)))

    # K shifted taps concatenated along the channel axis -> (B, K*Cin, M) so the
    # conv is a single big contraction per tile.
    # TODO(synk): replace this HBM im2col with in-kernel halo-slab tap building.
    if K == 1:
        xt = xb.reshape(B, Cin, M)
    else:
        taps = [xb[:, :, a:a + D, c:c + H, e:e + W].reshape(B, Cin, M)
                for a in range(kd) for c in range(kh) for e in range(kw)]
        xt = jnp.concatenate(taps, axis=1)

    # Pad the contraction (e.g. 216 -> 256) and M to a lane-aligned tile.
    Kcinp = _round_up(Kcin, 128) if Kcin >= 128 else _round_up(Kcin, 16)
    tm = _pick_tile_m(M, Kcinp, Cout, B)
    Mp = _round_up(M, tm)
    xt = jnp.pad(xt, ((0, 0), (0, Kcinp - Kcin), (0, Mp - M)))

    # Weights as (Cout, K*Cin) with matching (a, c, e, cin) column order.
    wt = jnp.transpose(w, (0, 2, 3, 4, 1)).reshape(Cout, Kcin).astype(jnp.bfloat16)
    wt = jnp.pad(wt, ((0, 0), (0, Kcinp - Kcin)))
    b2 = b.reshape(Cout, 1).astype(jnp.float32)

    out = pl.pallas_call(
        functools.partial(_conv_mm_kernel, relu=relu),
        out_shape=jax.ShapeDtypeStruct((B, Cout, Mp), jnp.float32),
        grid_spec=pltpu.PrefetchScalarGridSpec(
            num_scalar_prefetch=0,
            grid=(B, Mp // tm),
            in_specs=[
                pl.BlockSpec((1, Kcinp, tm), lambda bi, j: (bi, 0, j)),
                # weights / bias: constant index_map -> DMA'd once, kept resident
                pl.BlockSpec((Cout, Kcinp), lambda bi, j: (0, 0)),
                pl.BlockSpec((Cout, 1), lambda bi, j: (0, 0)),
            ],
            out_specs=pl.BlockSpec((1, Cout, tm), lambda bi, j: (bi, 0, j)),
        ),
        compiler_params=pltpu.CompilerParams(
            dimension_semantics=("parallel", "parallel"),
            vmem_limit_bytes=32 * 1024 * 1024),
    )(xt, wt, b2)

    return out[:, :, :M].reshape(B, Cout, D, H, W)


# ----------------------------------------------------------------------------
# Reference conv (XLA) for numerical validation of the Pallas kernel.
# Inputs are quantized to bf16 exactly like the Pallas path (f32 accumulate).
# ----------------------------------------------------------------------------
def ref_conv3d(x, w, b, *, relu=False):
    xq = x.astype(jnp.bfloat16).astype(jnp.float32)
    wq = w.astype(jnp.bfloat16).astype(jnp.float32)
    out = jax.lax.conv_general_dilated(
        xq, wq, window_strides=(1, 1, 1), padding="SAME",
        dimension_numbers=("NCDHW", "OIDHW", "NCDHW"))
    out = out + b.reshape(1, -1, 1, 1, 1)
    if relu:
        out = jnp.maximum(out, 0.0)
    return out


# ----------------------------------------------------------------------------
# RDN parameters (deterministic init, torch NCDHW/OIDHW layouts) and forward
# ----------------------------------------------------------------------------
def init_conv(key, k, cin, cout):
    wkey, bkey = jax.random.split(key)
    bound = 1.0 / math.sqrt(cin * k ** 3)
    w = jax.random.uniform(wkey, (cout, cin, k, k, k), jnp.float32, -bound, bound)
    b = jax.random.uniform(bkey, (cout,), jnp.float32, -bound, bound)
    return {"w": w, "b": b}


def init_rdn(key, *, feature_dim, num_features, growth_rate, num_blocks, num_layers):
    G0, G, Dn, C = num_features, growth_rate, num_blocks, num_layers
    keys = iter(jax.random.split(key, 5 + Dn * (C + 1)))
    params = {
        "sfe1": init_conv(next(keys), 3, 1, G0),
        "sfe2": init_conv(next(keys), 3, G0, G0),
        "rdbs": [],
        "gff0": init_conv(next(keys), 1, G * Dn, G0),
        "gff1": init_conv(next(keys), 3, G0, G0),
        "out":  init_conv(next(keys), 3, G0, feature_dim),
    }
    for i in range(Dn):
        in_ch = G0 if i == 0 else G
        rdb = {"dense": []}
        for j in range(C):
            rdb["dense"].append(init_conv(next(keys), 3, in_ch + G * j, G))
        rdb["lff"] = init_conv(next(keys), 1, in_ch + G * C, G)
        params["rdbs"].append(rdb)
    return params


def rdb_forward(conv_fn, x, p):
    # TODO(synk): fuse the whole RDB into one VMEM-resident pallas_call.
    h = x
    for dl in p["dense"]:
        y = conv_fn(h, dl["w"], dl["b"], relu=True)   # DenseLayer: cat([x, relu(conv(x))], 1)
        h = jnp.concatenate([h, y], axis=1)
    return x + conv_fn(h, p["lff"]["w"], p["lff"]["b"])  # local residual


def rdn_forward(x, params, conv_fn=conv3d):
    sfe1 = conv_fn(x, params["sfe1"]["w"], params["sfe1"]["b"])
    sfe2 = conv_fn(sfe1, params["sfe2"]["w"], params["sfe2"]["b"])
    h = sfe2
    local = []
    for rdb_p in params["rdbs"]:
        h = rdb_forward(conv_fn, h, rdb_p)
        local.append(h)
    g = conv_fn(jnp.concatenate(local, axis=1),
                params["gff0"]["w"], params["gff0"]["b"])     # 1x1x1 GFF
    g = conv_fn(g, params["gff1"]["w"], params["gff1"]["b"])  # 3x3x3 GFF
    h = g + sfe1                                              # global residual
    return conv_fn(h, params["out"]["w"], params["out"]["b"])


# ----------------------------------------------------------------------------
if __name__ == "__main__":
    key = jax.random.PRNGKey(0)
    pkey, xkey = jax.random.split(key)

    # Small hyper-parameters consistent with the module (G0 == G is required by
    # the residual add inside RDB, as in the PyTorch defaults).
    cfg = dict(feature_dim=16, num_features=8, growth_rate=8,
               num_blocks=2, num_layers=2)
    params = init_rdn(pkey, **cfg)

    # torch-style NCDHW input.
    B, Dd, Hh, Ww = 2, 8, 8, 8
    x = jax.random.normal(xkey, (B, 1, Dd, Hh, Ww), jnp.float32)

    fwd = jax.jit(lambda xx: rdn_forward(xx, params, conv_fn=conv3d))
    out = jax.block_until_ready(fwd(x))

    # Validate the Pallas path against XLA's conv (same bf16 input quantization).
    ref = rdn_forward(x, params, conv_fn=ref_conv3d)
    assert out.shape == (B, cfg["feature_dim"], Dd, Hh, Ww), out.shape
    assert jnp.allclose(out, ref, atol=5e-3, rtol=5e-3), \
        float(jnp.max(jnp.abs(out - ref)))

    print("KERNEL_OK")
</pallas_src>

<mosaic_0001>
module attributes {stable_mosaic.version = 11 : i64} {
  func.func @_conv_mm_kernel(%arg0: i32, %arg1: i32, %arg2: memref<1x32x512xbf16, #tpu.memory_space<vmem>>, %arg3: memref<8x32xbf16, #tpu.memory_space<vmem>>, %arg4: memref<8x1xf32, #tpu.memory_space<vmem>>, %arg5: memref<1x8x512xf32, #tpu.memory_space<vmem>>) attributes {dimension_semantics = [#tpu.dimension_semantics<parallel>, #tpu.dimension_semantics<parallel>], iteration_bounds = array<i64: 2, 1>, scalar_prefetch = 0 : i64, scratch_operands = 0 : i64, tpu.core_type = #tpu.core_type<tc>, window_params = [{transform_indices = @transform_0, window_bounds = array<i64: 1, 32, 512>}, {pipeline_mode = #tpu.pipeline_mode<synchronous>, transform_indices = @transform_1, window_bounds = array<i64: 8, 32>}, {pipeline_mode = #tpu.pipeline_mode<synchronous>, transform_indices = @transform_2, window_bounds = array<i64: 8, 1>}, {transform_indices = @transform_3, window_bounds = array<i64: 1, 8, 512>}]} {
    %c0 = arith.constant 0 : index
    %c0_0 = arith.constant 0 : index
    %0 = vector.load %arg3[%c0, %c0_0] : memref<8x32xbf16, #tpu.memory_space<vmem>>, vector<8x32xbf16>
    %c0_1 = arith.constant 0 : index
    %c0_2 = arith.constant 0 : index
    %c0_3 = arith.constant 0 : index
    %1 = vector.load %arg2[%c0_1, %c0_2, %c0_3] : memref<1x32x512xbf16, #tpu.memory_space<vmem>>, vector<1x32x512xbf16>
    %2 = vector.shape_cast %1 : vector<1x32x512xbf16> to vector<32x512xbf16>
    %cst = arith.constant dense<0.000000e+00> : vector<8x512xf32>
    %3 = tpu.matmul %0, %2, %cst {dimension_numbers = #tpu.dot_dimension_numbers<[1], [0], [0], [1], [0, 0, 1, 1], [], []>} : vector<8x32xbf16>, vector<32x512xbf16>, vector<8x512xf32> -> vector<8x512xf32>
    %c0_4 = arith.constant 0 : index
    %c0_5 = arith.constant 0 : index
    %4 = vector.load %arg4[%c0_4, %c0_5] : memref<8x1xf32, #tpu.memory_space<vmem>>, vector<8x1xf32>
    %5 = vector.broadcast %4 : vector<8x1xf32> to vector<8x512xf32>
    %6 = arith.addf %3, %5 : vector<8x512xf32>
    %c0_6 = arith.constant 0 : index
    %c0_7 = arith.constant 0 : index
    %c0_8 = arith.constant 0 : index
    %7 = vector.load %arg5[%c0_6, %c0_7, %c0_8] : memref<1x8x512xf32, #tpu.memory_space<vmem>>, vector<1x8x512xf32>
    %8 = vector.shape_cast %7 : vector<1x8x512xf32> to vector<8x512xf32>
    %9 = vector.shape_cast %6 : vector<8x512xf32> to vector<1x8x512xf32>
    tpu.vector_store %arg5[%c0_6, %c0_7, %c0_8], %9 {strides = array<i32>} : memref<1x8x512xf32, #tpu.memory_space<vmem>>, vector<1x8x512xf32>,
    return
  }
  func.func @transform_0(%arg0: i32, %arg1: i32) -> (i32, i32, i32) {
    %c0_i32 = arith.constant 0 : i32
    %c0_i32_0 = arith.constant 0 : i32
    return %arg0, %c0_i32, %arg1 : i32, i32, i32
  }
  func.func @transform_1(%arg0: i32, %arg1: i32) -> (i32, i32) {
    %c0_i32 = arith.constant 0 : i32
    %c0_i32_0 = arith.constant 0 : i32
    %c0_i32_1 = arith.constant 0 : i32
    return %c0_i32, %c0_i32_0 : i32, i32
  }
  func.func @transform_2(%arg0: i32, %arg1: i32) -> (i32, i32) {
    %c0_i32 = arith.constant 0 : i32
    %c0_i32_0 = arith.constant 0 : i32
    %c0_i32_1 = arith.constant 0 : i32
    return %c0_i32, %c0_i32_0 : i32, i32
  }
  func.func @transform_3(%arg0: i32, %arg1: i32) -> (i32, i32, i32) {
    %c0_i32 = arith.constant 0 : i32
    %c0_i32_0 = arith.constant 0 : i32
    return %arg0, %c0_i32, %arg1 : i32, i32, i32
  }
}

module attributes {stable_mosaic.version = 11 : i64} {
  func.func @_conv_mm_kernel(%arg0: i32, %arg1: i32, %arg2: memref<1x256x512xbf16, #tpu.memory_space<vmem>>, %arg3: memref<8x256xbf16, #tpu.memory_space<vmem>>, %arg4: memref<8x1xf32, #tpu.memory_space<vmem>>, %arg5: memref<1x8x512xf32, #tpu.memory_space<vmem>>) attributes {dimension_semantics = [#tpu.dimension_semantics<parallel>, #tpu.dimension_semantics<parallel>], iteration_bounds = array<i64: 2, 1>, scalar_prefetch = 0 : i64, scratch_operands = 0 : i64, tpu.core_type = #tpu.core_type<tc>, window_params = [{transform_indices = @transform_0, window_bounds = array<i64: 1, 256, 512>}, {pipeline_mode = #tpu.pipeline_mode<synchronous>, transform_indices = @transform_1, window_bounds = array<i64: 8, 256>}, {pipeline_mode = #tpu.pipeline_mode<synchronous>, transform_indices = @transform_2, window_bounds = array<i64: 8, 1>}, {transform_indices = @transform_3, window_bounds = array<i64: 1, 8, 512>}]} {
    %c0 = arith.constant 0 : index
    %c0_0 = arith.constant 0 : index
    %0 = vector.load %arg3[%c0, %c0_0] : memref<8x256xbf16, #tpu.memory_space<vmem>>, vector<8x256xbf16>
    %c0_1 = arith.constant 0 : index
    %c0_2 = arith.constant 0 : index
    %c0_3 = arith.constant 0 : index
    %1 = vector.load %arg2[%c0_1, %c0_2, %c0_3] : memref<1x256x512xbf16, #tpu.memory_space<vmem>>, vector<1x256x512xbf16>
    %2 = vector.shape_cast %1 : vector<1x256x512xbf16> to vector<256x512xbf16>
    %cst = arith.constant dense<0.000000e+00> : vector<8x512xf32>
    %3 = tpu.matmul %0, %2, %cst {dimension_numbers = #tpu.dot_dimension_numbers<[1], [0], [0], [1], [0, 0, 1, 1], [], []>} : vector<8x256xbf16>, vector<256x512xbf16>, vector<8x512xf32> -> vector<8x512xf32>
    %c0_4 = arith.constant 0 : index
    %c0_5 = arith.constant 0 : index
    %4 = vector.load %arg4[%c0_4, %c0_5] : memref<8x1xf32, #tpu.memory_space<vmem>>, vector<8x1xf32>
    %5 = vector.broadcast %4 : vector<8x1xf32> to vector<8x512xf32>
    %6 = arith.addf %3, %5 : vector<8x512xf32>
    %c0_6 = arith.constant 0 : index
    %c0_7 = arith.constant 0 : index
    %c0_8 = arith.constant 0 : index
    %7 = vector.load %arg5[%c0_6, %c0_7, %c0_8] : memref<1x8x512xf32, #tpu.memory_space<vmem>>, vector<1x8x512xf32>
    %8 = vector.shape_cast %7 : vector<1x8x512xf32> to vector<8x512xf32>
    %9 = vector.shape_cast %6 : vector<8x512xf32> to vector<1x8x512xf32>
    tpu.vector_store %arg5[%c0_6, %c0_7, %c0_8], %9 {strides = array<i32>} : memref<1x8x512xf32, #tpu.memory_space<vmem>>, vector<1x8x512xf32>,
    return
  }
  func.func @transform_0(%arg0: i32, %arg1: i32) -> (i32, i32, i32) {
    %c0_i32 = arith.constant 0 : i32
    %c0_i32_0 = arith.constant 0 : i32
    return %arg0, %c0_i32, %arg1 : i32, i32, i32
  }
  func.func @transform_1(%arg0: i32, %arg1: i32) -> (i32, i32) {
    %c0_i32 = arith.constant 0 : i32
    %c0_i32_0 = arith.constant 0 : i32
    %c0_i32_1 = arith.constant 0 : i32
    return %c0_i32, %c0_i32_0 : i32, i32
  }
  func.func @transform_2(%arg0: i32, %arg1: i32) -> (i32, i32) {
    %c0_i32 = arith.constant 0 : i32
    %c0_i32_0 = arith.constant 0 : i32
    %c0_i32_1 = arith.constant 0 : i32
    return %c0_i32, %c0_i32_0 : i32, i32
  }
  func.func @transform_3(%arg0: i32, %arg1: i32) -> (i32, i32, i32) {
    %c0_i32 = arith.constant 0 : i32
    %c0_i32_0 = arith.constant 0 : i32
    return %arg0, %c0_i32, %arg1 : i32, i32, i32
  }
}

module attributes {stable_mosaic.version = 11 : i64} {
  func.func @_conv_mm_kernel(%arg0: i32, %arg1: i32, %arg2: memref<1x256x512xbf16, #tpu.memory_space<vmem>>, %arg3: memref<8x256xbf16, #tpu.memory_space<vmem>>, %arg4: memref<8x1xf32, #tpu.memory_space<vmem>>, %arg5: memref<1x8x512xf32, #tpu.memory_space<vmem>>) attributes {dimension_semantics = [#tpu.dimension_semantics<parallel>, #tpu.dimension_semantics<parallel>], iteration_bounds = array<i64: 2, 1>, scalar_prefetch = 0 : i64, scratch_operands = 0 : i64, tpu.core_type = #tpu.core_type<tc>, window_params = [{transform_indices = @transform_0, window_bounds = array<i64: 1, 256, 512>}, {pipeline_mode = #tpu.pipeline_mode<synchronous>, transform_indices = @transform_1, window_bounds = array<i64: 8, 256>}, {pipeline_mode = #tpu.pipeline_mode<synchronous>, transform_indices = @transform_2, window_bounds = array<i64: 8, 1>}, {transform_indices = @transform_3, window_bounds = array<i64: 1, 8, 512>}]} {
    %c0 = arith.constant 0 : index
    %c0_0 = arith.constant 0 : index
    %0 = vector.load %arg3[%c0, %c0_0] : memref<8x256xbf16, #tpu.memory_space<vmem>>, vector<8x256xbf16>
    %c0_1 = arith.constant 0 : index
    %c0_2 = arith.constant 0 : index
    %c0_3 = arith.constant 0 : index
    %1 = vector.load %arg2[%c0_1, %c0_2, %c0_3] : memref<1x256x512xbf16, #tpu.memory_space<vmem>>, vector<1x256x512xbf16>
    %2 = vector.shape_cast %1 : vector<1x256x512xbf16> to vector<256x512xbf16>
    %cst = arith.constant dense<0.000000e+00> : vector<8x512xf32>
    %3 = tpu.matmul %0, %2, %cst {dimension_numbers = #tpu.dot_dimension_numbers<[1], [0], [0], [1], [0, 0, 1, 1], [], []>} : vector<8x256xbf16>, vector<256x512xbf16>, vector<8x512xf32> -> vector<8x512xf32>
    %c0_4 = arith.constant 0 : index
    %c0_5 = arith.constant 0 : index
    %4 = vector.load %arg4[%c0_4, %c0_5] : memref<8x1xf32, #tpu.memory_space<vmem>>, vector<8x1xf32>
    %5 = vector.broadcast %4 : vector<8x1xf32> to vector<8x512xf32>
    %6 = arith.addf %3, %5 : vector<8x512xf32>
    %cst_6 = arith.constant 0.000000e+00 : f32
    %7 = vector.broadcast %cst_6 : f32 to vector<8x512xf32>
    %8 = arith.maximumf %6, %7 : vector<8x512xf32>
    %c0_7 = arith.constant 0 : index
    %c0_8 = arith.constant 0 : index
    %c0_9 = arith.constant 0 : index
    %9 = vector.load %arg5[%c0_7, %c0_8, %c0_9] : memref<1x8x512xf32, #tpu.memory_space<vmem>>, vector<1x8x512xf32>
    %10 = vector.shape_cast %9 : vector<1x8x512xf32> to vector<8x512xf32>
    %11 = vector.shape_cast %8 : vector<8x512xf32> to vector<1x8x512xf32>
    tpu.vector_store %arg5[%c0_7, %c0_8, %c0_9], %11 {strides = array<i32>} : memref<1x8x512xf32, #tpu.memory_space<vmem>>, vector<1x8x512xf32>,
    return
  }
  func.func @transform_0(%arg0: i32, %arg1: i32) -> (i32, i32, i32) {
    %c0_i32 = arith.constant 0 : i32
    %c0_i32_0 = arith.constant 0 : i32
    return %arg0, %c0_i32, %arg1 : i32, i32, i32
  }
  func.func @transform_1(%arg0: i32, %arg1: i32) -> (i32, i32) {
    %c0_i32 = arith.constant 0 : i32
    %c0_i32_0 = arith.constant 0 : i32
    %c0_i32_1 = arith.constant 0 : i32
    return %c0_i32, %c0_i32_0 : i32, i32
  }
  func.func @transform_2(%arg0: i32, %arg1: i32) -> (i32, i32) {
    %c0_i32 = arith.constant 0 : i32
    %c0_i32_0 = arith.constant 0 : i32
    %c0_i32_1 = arith.constant 0 : i32
    return %c0_i32, %c0_i32_0 : i32, i32
  }
  func.func @transform_3(%arg0: i32, %arg1: i32) -> (i32, i32, i32) {
    %c0_i32 = arith.constant 0 : i32
    %c0_i32_0 = arith.constant 0 : i32
    return %arg0, %c0_i32, %arg1 : i32, i32, i32
  }
}

module attributes {stable_mosaic.version = 11 : i64} {
  func.func @_conv_mm_kernel(%arg0: i32, %arg1: i32, %arg2: memref<1x512x512xbf16, #tpu.memory_space<vmem>>, %arg3: memref<8x512xbf16, #tpu.memory_space<vmem>>, %arg4: memref<8x1xf32, #tpu.memory_space<vmem>>, %arg5: memref<1x8x512xf32, #tpu.memory_space<vmem>>) attributes {dimension_semantics = [#tpu.dimension_semantics<parallel>, #tpu.dimension_semantics<parallel>], iteration_bounds = array<i64: 2, 1>, scalar_prefetch = 0 : i64, scratch_operands = 0 : i64, tpu.core_type = #tpu.core_type<tc>, window_params = [{transform_indices = @transform_0, window_bounds = array<i64: 1, 512, 512>}, {pipeline_mode = #tpu.pipeline_mode<synchronous>, transform_indices = @transform_1, window_bounds = array<i64: 8, 512>}, {pipeline_mode = #tpu.pipeline_mode<synchronous>, transform_indices = @transform_2, window_bounds = array<i64: 8, 1>}, {transform_indices = @transform_3, window_bounds = array<i64: 1, 8, 512>}]} {
    %c0 = arith.constant 0 : index
    %c0_0 = arith.constant 0 : index
    %0 = vector.load %arg3[%c0, %c0_0] : memref<8x512xbf16, #tpu.memory_space<vmem>>, vector<8x512xbf16>
    %c0_1 = arith.constant 0 : index
    %c0_2 = arith.constant 0 : index
    %c0_3 = arith.constant 0 : index
    %1 = vector.load %arg2[%c0_1, %c0_2, %c0_3] : memref<1x512x512xbf16, #tpu.memory_space<vmem>>, vector<1x512x512xbf16>
    %2 = vector.shape_cast %1 : vector<1x512x512xbf16> to vector<512x512xbf16>
    %cst = arith.constant dense<0.000000e+00> : vector<8x512xf32>
    %3 = tpu.matmul %0, %2, %cst {dimension_numbers = #tpu.dot_dimension_numbers<[1], [0], [0], [1], [0, 0, 1, 1], [], []>} : vector<8x512xbf16>, vector<512x512xbf16>, vector<8x512xf32> -> vector<8x512xf32>
    %c0_4 = arith.constant 0 : index
    %c0_5 = arith.constant 0 : index
    %4 = vector.load %arg4[%c0_4, %c0_5] : memref<8x1xf32, #tpu.memory_space<vmem>>, vector<8x1xf32>
    %5 = vector.broadcast %4 : vector<8x1xf32> to vector<8x512xf32>
    %6 = arith.addf %3, %5 : vector<8x512xf32>
    %cst_6 = arith.constant 0.000000e+00 : f32
    %7 = vector.broadcast %cst_6 : f32 to vector<8x512xf32>
    %8 = arith.maximumf %6, %7 : vector<8x512xf32>
    %c0_7 = arith.constant 0 : index
    %c0_8 = arith.constant 0 : index
    %c0_9 = arith.constant 0 : index
    %9 = vector.load %arg5[%c0_7, %c0_8, %c0_9] : memref<1x8x512xf32, #tpu.memory_space<vmem>>, vector<1x8x512xf32>
    %10 = vector.shape_cast %9 : vector<1x8x512xf32> to vector<8x512xf32>
    %11 = vector.shape_cast %8 : vector<8x512xf32> to vector<1x8x512xf32>
    tpu.vector_store %arg5[%c0_7, %c0_8, %c0_9], %11 {strides = array<i32>} : memref<1x8x512xf32, #tpu.memory_space<vmem>>, vector<1x8x512xf32>,
    return
  }
  func.func @transform_0(%arg0: i32, %arg1: i32) -> (i32, i32, i32) {
    %c0_i32 = arith.constant 0 : i32
    %c0_i32_0 = arith.constant 0 : i32
    return %arg0, %c0_i32, %arg1 : i32, i32, i32
  }
  func.func @transform_1(%arg0: i32, %arg1: i32) -> (i32, i32) {
    %c0_i32 = arith.constant 0 : i32
    %c0_i32_0 = arith.constant 0 : i32
    %c0_i32_1 = arith.constant 0 : i32
    return %c0_i32, %c0_i32_0 : i32, i32
  }
  func.func @transform_2(%arg0: i32, %arg1: i32) -> (i32, i32) {
    %c0_i32 = arith.constant 0 : i32
    %c0_i32_0 = arith.constant 0 : i32
    %c0_i32_1 = arith.constant 0 : i32
    return %c0_i32, %c0_i32_0 : i32, i32
  }
  func.func @transform_3(%arg0: i32, %arg1: i32) -> (i32, i32, i32) {
    %c0_i32 = arith.constant 0 : i32
    %c0_i32_0 = arith.constant 0 : i32
    return %arg0, %c0_i32, %arg1 : i32, i32, i32
  }
}

module attributes {stable_mosaic.version = 11 : i64} {
  func.func @_conv_mm_kernel(%arg0: i32, %arg1: i32, %arg2: memref<1x16x512xbf16, #tpu.memory_space<vmem>>, %arg3: memref<8x16xbf16, #tpu.memory_space<vmem>>, %arg4: memref<8x1xf32, #tpu.memory_space<vmem>>, %arg5: memref<1x8x512xf32, #tpu.memory_space<vmem>>) attributes {dimension_semantics = [#tpu.dimension_semantics<parallel>, #tpu.dimension_semantics<parallel>], iteration_bounds = array<i64: 2, 1>, scalar_prefetch = 0 : i64, scratch_operands = 0 : i64, tpu.core_type = #tpu.core_type<tc>, window_params = [{transform_indices = @transform_0, window_bounds = array<i64: 1, 16, 512>}, {pipeline_mode = #tpu.pipeline_mode<synchronous>, transform_indices = @transform_1, window_bounds = array<i64: 8, 16>}, {pipeline_mode = #tpu.pipeline_mode<synchronous>, transform_indices = @transform_2, window_bounds = array<i64: 8, 1>}, {transform_indices = @transform_3, window_bounds = array<i64: 1, 8, 512>}]} {
    %c0 = arith.constant 0 : index
    %c0_0 = arith.constant 0 : index
    %0 = vector.load %arg3[%c0, %c0_0] : memref<8x16xbf16, #tpu.memory_space<vmem>>, vector<8x16xbf16>
    %c0_1 = arith.constant 0 : index
    %c0_2 = arith.constant 0 : index
    %c0_3 = arith.constant 0 : index
    %1 = vector.load %arg2[%c0_1, %c0_2, %c0_3] : memref<1x16x512xbf16, #tpu.memory_space<vmem>>, vector<1x16x512xbf16>
    %2 = vector.shape_cast %1 : vector<1x16x512xbf16> to vector<16x512xbf16>
    %cst = arith.constant dense<0.000000e+00> : vector<8x512xf32>
    %3 = tpu.matmul %0, %2, %cst {dimension_numbers = #tpu.dot_dimension_numbers<[1], [0], [0], [1], [0, 0, 1, 1], [], []>} : vector<8x16xbf16>, vector<16x512xbf16>, vector<8x512xf32> -> vector<8x512xf32>
    %c0_4 = arith.constant 0 : index
    %c0_5 = arith.constant 0 : index
    %4 = vector.load %arg4[%c0_4, %c0_5] : memref<8x1xf32, #tpu.memory_space<vmem>>, vector<8x1xf32>
    %5 = vector.broadcast %4 : vector<8x1xf32> to vector<8x512xf32>
    %6 = arith.addf %3, %5 : vector<8x512xf32>
    %c0_6 = arith.constant 0 : index
    %c0_7 = arith.constant 0 : index
    %c0_8 = arith.constant 0 : index
    %7 = vector.load %arg5[%c0_6, %c0_7, %c0_8] : memref<1x8x512xf32, #tpu.memory_space<vmem>>, vector<1x8x512xf32>
    %8 = vector.shape_cast %7 : vector<1x8x512xf32> to vector<8x512xf32>
    %9 = vector.shape_cast %6 : vector<8x512xf32> to vector<1x8x512xf32>
    tpu.vector_store %arg5[%c0_6, %c0_7, %c0_8], %9 {strides = array<i32>} : memref<1x8x512xf32, #tpu.memory_space<vmem>>, vector<1x8x512xf32>,
    return
  }
  func.func @transform_0(%arg0: i32, %arg1: i32) -> (i32, i32, i32) {
    %c0_i32 = arith.constant 0 : i32
    %c0_i32_0 = arith.constant 0 : i32
    return %arg0, %c0_i32, %arg1 : i32, i32, i32
  }
  func.func @transform_1(%arg0: i32, %arg1: i32) -> (i32, i32) {
    %c0_i32 = arith.constant 0 : i32
    %c0_i32_0 = arith.constant 0 : i32
    %c0_i32_1 = arith.constant 0 : i32
    return %c0_i32, %c0_i32_0 : i32, i32
  }
  func.func @transform_2(%arg0: i32, %arg1: i32) -> (i32, i32) {
    %c0_i32 = arith.constant 0 : i32
    %c0_i32_0 = arith.constant 0 : i32
    %c0_i32_1 = arith.constant 0 : i32
    return %c0_i32, %c0_i32_0 : i32, i32
  }
  func.func @transform_3(%arg0: i32, %arg1: i32) -> (i32, i32, i32) {
    %c0_i32 = arith.constant 0 : i32
    %c0_i32_0 = arith.constant 0 : i32
    return %arg0, %c0_i32, %arg1 : i32, i32, i32
  }
}

module attributes {stable_mosaic.version = 11 : i64} {
  func.func @_conv_mm_kernel(%arg0: i32, %arg1: i32, %arg2: memref<1x256x512xbf16, #tpu.memory_space<vmem>>, %arg3: memref<16x256xbf16, #tpu.memory_space<vmem>>, %arg4: memref<16x1xf32, #tpu.memory_space<vmem>>, %arg5: memref<1x16x512xf32, #tpu.memory_space<vmem>>) attributes {dimension_semantics = [#tpu.dimension_semantics<parallel>, #tpu.dimension_semantics<parallel>], iteration_bounds = array<i64: 2, 1>, scalar_prefetch = 0 : i64, scratch_operands = 0 : i64, tpu.core_type = #tpu.core_type<tc>, window_params = [{transform_indices = @transform_0, window_bounds = array<i64: 1, 256, 512>}, {pipeline_mode = #tpu.pipeline_mode<synchronous>, transform_indices = @transform_1, window_bounds = array<i64: 16, 256>}, {pipeline_mode = #tpu.pipeline_mode<synchronous>, transform_indices = @transform_2, window_bounds = array<i64: 16, 1>}, {transform_indices = @transform_3, window_bounds = array<i64: 1, 16, 512>}]} {
    %c0 = arith.constant 0 : index
    %c0_0 = arith.constant 0 : index
    %0 = vector.load %arg3[%c0, %c0_0] : memref<16x256xbf16, #tpu.memory_space<vmem>>, vector<16x256xbf16>
    %c0_1 = arith.constant 0 : index
    %c0_2 = arith.constant 0 : index
    %c0_3 = arith.constant 0 : index
    %1 = vector.load %arg2[%c0_1, %c0_2, %c0_3] : memref<1x256x512xbf16, #tpu.memory_space<vmem>>, vector<1x256x512xbf16>
    %2 = vector.shape_cast %1 : vector<1x256x512xbf16> to vector<256x512xbf16>
    %cst = arith.constant dense<0.000000e+00> : vector<16x512xf32>
    %3 = tpu.matmul %0, %2, %cst {dimension_numbers = #tpu.dot_dimension_numbers<[1], [0], [0], [1], [0, 0, 1, 1], [], []>} : vector<16x256xbf16>, vector<256x512xbf16>, vector<16x512xf32> -> vector<16x512xf32>
    %c0_4 = arith.constant 0 : index
    %c0_5 = arith.constant 0 : index
    %4 = vector.load %arg4[%c0_4, %c0_5] : memref<16x1xf32, #tpu.memory_space<vmem>>, vector<16x1xf32>
    %5 = vector.broadcast %4 : vector<16x1xf32> to vector<16x512xf32>
    %6 = arith.addf %3, %5 : vector<16x512xf32>
    %c0_6 = arith.constant 0 : index
    %c0_7 = arith.constant 0 : index
    %c0_8 = arith.constant 0 : index
    %7 = vector.load %arg5[%c0_6, %c0_7, %c0_8] : memref<1x16x512xf32, #tpu.memory_space<vmem>>, vector<1x16x512xf32>
    %8 = vector.shape_cast %7 : vector<1x16x512xf32> to vector<16x512xf32>
    %9 = vector.shape_cast %6 : vector<16x512xf32> to vector<1x16x512xf32>
    tpu.vector_store %arg5[%c0_6, %c0_7, %c0_8], %9 {strides = array<i32>} : memref<1x16x512xf32, #tpu.memory_space<vmem>>, vector<1x16x512xf32>,
    return
  }
  func.func @transform_0(%arg0: i32, %arg1: i32) -> (i32, i32, i32) {
    %c0_i32 = arith.constant 0 : i32
    %c0_i32_0 = arith.constant 0 : i32
    return %arg0, %c0_i32, %arg1 : i32, i32, i32
  }
  func.func @transform_1(%arg0: i32, %arg1: i32) -> (i32, i32) {
    %c0_i32 = arith.constant 0 : i32
    %c0_i32_0 = arith.constant 0 : i32
    %c0_i32_1 = arith.constant 0 : i32
    return %c0_i32, %c0_i32_0 : i32, i32
  }
  func.func @transform_2(%arg0: i32, %arg1: i32) -> (i32, i32) {
    %c0_i32 = arith.constant 0 : i32
    %c0_i32_0 = arith.constant 0 : i32
    %c0_i32_1 = arith.constant 0 : i32
    return %c0_i32, %c0_i32_0 : i32, i32
  }
  func.func @transform_3(%arg0: i32, %arg1: i32) -> (i32, i32, i32) {
    %c0_i32 = arith.constant 0 : i32
    %c0_i32_0 = arith.constant 0 : i32
    return %arg0, %c0_i32, %arg1 : i32, i32, i32
  }
}

</mosaic_0001>

<bundles_post_ra>
// kernel: _lambda_.11
= control target key start
LH: loop header
LB: loop body
LE: loop exit
PB: predicated region body
PF: predicated region fallthrough
CT: control target
= control target key end

     0   :  { %s549_s12 = smov 0   ;;  %s551_s13 = smov 0   ;;  %s588_s0 = inlined_call_operand.vmem [shape: bf16[2,32,512], index: 0, kind: input, shape index: {}]   ;;  %s589_s1 = inlined_call_operand.vmem [shape: bf16[8,32], index: 1, kind: input, shape index: {}]   ;;  %s590_s2 = inlined_call_operand.vmem [shape: f32[8,1], index: 2, kind: input, shape index: {}]   ;;  %s591_s3 = inlined_call_operand.vmem [shape: f32[2,8,512], index: 3, kind: output, shape index: {}]  }
   0x1   :  { %s553_s14 = smov 0  }
   0x2 LB: > { %s25_s15 = sadd.s32 1, %s522_s13  ;;  %p447_p0 = scmp.ge.s32.totalorder %s526_s14, 1  ;;  %s526_s14 = sphi %s553_s14, %s13_s14   ;;  %s522_s13 = sphi %s551_s13, %s593_s13   ;;  %s518_s12 = sphi %s549_s12, %s592_s12  }
   0x3   : > { %p27_p1 = scmp.ge.s32.totalorder %s25_s15, 2  ;;  %p158_p2 = scmp.lt.s32.totalorder %s526_s14, 3 }
   0x5   : > { %s595_s15 = smov (%p27_p1, %s25_s15), 0  ;;  %p159_p3 = pnand %p447_p0, %p158_p2 }
   0x6   : > { %p191_p4 = scmp.lt.s32.totalorder (!%p159_p3), %s518_s12, 1  ;;  %v220_v0 = vld [vmem:[%s590_s2] sm:$0xff] (!%p159_p3)  ;;  %v528_v1 = vmov (!%p159_p3), 0   ;;  %vm266_vm0 = vcmask (!%p159_p3), 261120  }
   0x7   : > { %162 = sbr.rel (%p159_p3) target bundleno = 242 (0xf2), region = 32  ;;  %302 = vmatprep.mubr.bf16.mxu0 (!%p159_p3), %v528_v1  ;;  %343 = vmatprep.mubr.bf16.mxu1 (!%p159_p3), %v528_v1  ;;  %v211_v10 = vld [vmem:[%s589_s1] sm:$0xf] (!%p159_p3) }
   0x8   : > { %491 = vset.pattern.permute.xlu0 (!%p159_p3), %v528_v1 }
   0x9   : > { %223 = vperm.xlu0 (!%p159_p3), %491, %v220_v0  }
   0xe   : > { %s597_s12 = smov (!%p191_p4, %s518_s12), 1 }
   0xf   : > { %s464_s18 = sshll.u32 %s597_s12, 6  ;;  %s465_s24 = sshll.u32 %s597_s12, 5 }
  0x10   : > { %s198_s21 = scalar_lea.vmem %s588_s0, %s464_s18  ;;  %s208_s27 = scalar_lea.vmem %s591_s3, %s465_s24 }
  0x11   : > { %v492_v2 = vld [vmem:[%s198_s21 + $0x4] ss:$16 sps:$4 sm:$0xff]   ;;  %v494_v3 = vld [vmem:[%s198_s21 + $0xc] ss:$16 sps:$4 sm:$0xff]   ;;  %v496_v4 = vld [vmem:[%s198_s21] ss:$16 sps:$4 sm:$0xff]  }
  0x12   : > { %270 = vmatprep.subr.bf16.mxu0 %v492_v2  ;;  %v497_v5 = vld [vmem:[%s198_s21 + $0x8] ss:$16 sps:$4 sm:$0xff]   ;;  %311 = vmatprep.subr.bf16.mxu1 %v494_v3  ;;  %v498_v6 = vld [vmem:[%s198_s21 + $0x24] ss:$16 sps:$4 sm:$0xff]   ;;  %v500_v7 = vld [vmem:[%s198_s21 + $0x2c] ss:$16 sps:$4 sm:$0xff]  }
  0x13   : > { %271 = vmatpush1.bf16.msra.mxu0 %v496_v4  ;;  %312 = vmatpush1.bf16.msra.mxu1 %v497_v5  ;;  %v502_v8 = vld [vmem:[%s198_s21 + $0x20] ss:$16 sps:$4 sm:$0xff]   ;;  %v503_v9 = vld [vmem:[%s198_s21 + $0x28] ss:$16 sps:$4 sm:$0xff]  }
  0x14   : > { %272 = vmatprep.subr.bf16.mxu0 %v498_v6  ;;  %313 = vmatprep.subr.bf16.mxu1 %v500_v7 }
  0x17   : > { %273 = vmatpush1.bf16.msra.mxu0 %v502_v8  ;;  %314 = vmatpush1.bf16.msra.mxu1 %v503_v9 }
  0x1a   : > { %460 = vmatmul.mubr.msk.bf16.vlgmr.msra.gmra.mrb[0].mxu0 %vm266_vm0, %v211_v10  ;;  %461 = vmatmul.mubr.msk.bf16.vlgmr.msra.gmra.mrb[0].mxu1 %vm266_vm0, %v211_v10 }
  0x88   : > { %v224_v11 = vpop.permute.xlu0 %223 }
  0xed   : > { %v304_v12 = vpop.f32.mrb[0].mxu0  ;;  %v345_v13 = vpop.f32.mrb[0].mxu1 }
  0xee   : > { %v305_v14 = vadd.f32 %v304_v12, %v224_v11  ;;  %v346_v15 = vadd.f32 %v345_v13, %v224_v11  ;;  %v306_v16 = vpop.f32.mrb[1].mxu0  ;;  %v347_v17 = vpop.f32.mrb[1].mxu1 }
  0xef   : > { %v307_v18 = vadd.f32 %v306_v16, %v224_v11  ;;  %v348_v19 = vadd.f32 %v347_v17, %v224_v11  ;;  %v308_v20 = vpop.f32.mrb[2].mxu0  ;;  %v349_v21 = vpop.f32.mrb[2].mxu1 }
  0xf0   : > { %352 = vst [vmem:[%s208_s27] sm:$0xff] %v305_v14  ;;  %354 = vst [vmem:[%s208_s27 + $0x10] sm:$0xff] %v346_v15  ;;  %v309_v22 = vpop.f32.mrb[3].mxu0  ;;  %v350_v23 = vpop.f32.mrb[3].mxu1 }
  0xf1   : > { %353 = vst [vmem:[%s208_s27 + $0x8] sm:$0xff] %v307_v18  ;;  %355 = vst [vmem:[%s208_s27 + $0x18] sm:$0xff] %v348_v19 }
  0xf2 PF: > { %s13_s14 = sadd.s32 1, %s526_s14   ;;  %s592_s12 = smov %s522_s13 }
  0xf3   : > { %p10_p5 = scmp.ge.s32.totalorder %s13_s14, 4   ;;  %s593_s13 = smov %s595_s15 }
  0xf5   :  { %12 = sbr.rel (!%p10_p5) target bundleno = 2 (0x2), region = 62 }

// kernel: _lambda_.12
= control target key start
LH: loop header
LB: loop body
LE: loop exit
PB: predicated region body
PF: predicated region fallthrough
CT: control target
= control target key end

     0   :  { %s1029_s12 = smov 0   ;;  %s1031_s13 = smov 0   ;;  %s1144_s0 = inlined_call_operand.vmem [shape: bf16[2,256,512], index: 0, kind: input, shape index: {}]   ;;  %s1145_s1 = inlined_call_operand.vmem [shape: bf16[8,256], index: 1, kind: input, shape index: {}]   ;;  %s1146_s2 = inlined_call_operand.vmem [shape: f32[8,1], index: 2, kind: input, shape index: {}]   ;;  %s1147_s3 = inlined_call_operand.vmem [shape: f32[2,8,512], index: 3, kind: output, shape index: {}]  }
   0x1   :  { %s1033_s14 = smov 0  }
   0x2 LB: > { %s25_s15 = sadd.s32 1, %s1002_s13  ;;  %p785_p0 = scmp.ge.s32.totalorder %s1006_s14, 1  ;;  %s1006_s14 = sphi %s1033_s14, %s13_s14   ;;  %s1002_s13 = sphi %s1031_s13, %s1149_s13   ;;  %s998_s12 = sphi %s1029_s12, %s1148_s12  }
   0x3   : > { %p27_p1 = scmp.ge.s32.totalorder %s25_s15, 2  ;;  %p158_p2 = scmp.lt.s32.totalorder %s1006_s14, 3 }
   0x5   : > { %s1151_s15 = smov (%p27_p1, %s25_s15), 0  ;;  %p159_p3 = pnand %p785_p0, %p158_p2 }
   0x6   : > { %p191_p4 = scmp.lt.s32.totalorder (!%p159_p3), %s998_s12, 1  ;;  %v1050_v0 = vld [vmem:[%s1145_s1] sm:$0xff] (!%p159_p3)  ;;  %v1008_v3 = vmov (!%p159_p3), 0  }
   0x7   : > { %162 = sbr.rel (%p159_p3) target bundleno = 298 (0x12a), region = 32  ;;  %v275_v1 = vld [vmem:[%s1146_s2] sm:$0xff] (!%p159_p3)  ;;  %v791_v2 = vcombine.high (!%p159_p3), %v1050_v0, %v1050_v0  ;;  %885 = vset.pattern.permute.xlu0 (!%p159_p3), %v1008_v3 }
   0x8   : > { %278 = vperm.xlu0 (!%p159_p3), %885, %v275_v1  }
   0x9   : > { %640 = vmatprep.mubr.bf16.mxu0 (!%p159_p3), %v791_v2  ;;  %681 = vmatprep.mubr.bf16.mxu1 (!%p159_p3), %v791_v2 }
   0xe   : > { %s1153_s12 = smov (!%p191_p4, %s998_s12), 1 }
   0xf   : > { %s858_s20 = sshll.u32 %s1153_s12, 9  ;;  %s859_s24 = sshll.u32 %s1153_s12, 5 }
  0x10   : > { %s1063_s23 = scalar_lea.vmem %s1144_s0, %s858_s20  ;;  %s208_s27 = scalar_lea.vmem %s1147_s3, %s859_s24 }
  0x11   : > { %v886_v4 = vld [vmem:[%s1063_s23 + $0x4] ss:$16 sps:$4 sm:$0xff]   ;;  %v888_v5 = vld [vmem:[%s1063_s23 + $0xc] ss:$16 sps:$4 sm:$0xff]   ;;  %v890_v6 = vld [vmem:[%s1063_s23] ss:$16 sps:$4 sm:$0xff]  }
  0x12   : > { %608 = vmatprep.subr.bf16.mxu0 %v886_v4  ;;  %v891_v7 = vld [vmem:[%s1063_s23 + $0x8] ss:$16 sps:$4 sm:$0xff]   ;;  %649 = vmatprep.subr.bf16.mxu1 %v888_v5  ;;  %v892_v8 = vld [vmem:[%s1063_s23 + $0x24] ss:$16 sps:$4 sm:$0xff]   ;;  %v894_v9 = vld [vmem:[%s1063_s23 + $0x2c] ss:$16 sps:$4 sm:$0xff]   ;;  %v790_v5 = vcombine.low %v1050_v0, %v1050_v0 }
  0x13   : > { %609 = vmatpush1.bf16.msra.mxu0 %v890_v6  ;;  %650 = vmatpush1.bf16.msra.mxu1 %v891_v7  ;;  %v896_v10 = vld [vmem:[%s1063_s23 + $0x20] ss:$16 sps:$4 sm:$0xff]   ;;  %v897_v11 = vld [vmem:[%s1063_s23 + $0x28] ss:$16 sps:$4 sm:$0xff]   ;;  %v898_v12 = vld [vmem:[%s1063_s23 + $0x44] ss:$16 sps:$4 sm:$0xff]  }
  0x14   : > { %610 = vmatprep.subr.bf16.mxu0 %v892_v8  ;;  %651 = vmatprep.subr.bf16.mxu1 %v894_v9  ;;  %v900_v13 = vld [vmem:[%s1063_s23 + $0x4c] ss:$16 sps:$4 sm:$0xff]   ;;  %v902_v14 = vld [vmem:[%s1063_s23 + $0x40] ss:$16 sps:$4 sm:$0xff]   ;;  %v903_v15 = vld [vmem:[%s1063_s23 + $0x48] ss:$16 sps:$4 sm:$0xff]  }
  0x15   : > { %v904_v16 = vld [vmem:[%s1063_s23 + $0x64] ss:$16 sps:$4 sm:$0xff]   ;;  %v906_v17 = vld [vmem:[%s1063_s23 + $0x6c] ss:$16 sps:$4 sm:$0xff]   ;;  %v908_v18 = vld [vmem:[%s1063_s23 + $0x60] ss:$16 sps:$4 sm:$0xff]  }
  0x16   : > { %v909_v19 = vld [vmem:[%s1063_s23 + $0x68] ss:$16 sps:$4 sm:$0xff]   ;;  %v910_v20 = vld [vmem:[%s1063_s23 + $0x84] ss:$16 sps:$4 sm:$0xff]   ;;  %v912_v21 = vld [vmem:[%s1063_s23 + $0x8c] ss:$16 sps:$4 sm:$0xff]  }
  0x17   : > { %611 = vmatpush1.bf16.msra.mxu0 %v896_v10  ;;  %652 = vmatpush1.bf16.msra.mxu1 %v897_v11  ;;  %v914_v22 = vld [vmem:[%s1063_s23 + $0x80] ss:$16 sps:$4 sm:$0xff]   ;;  %v915_v23 = vld [vmem:[%s1063_s23 + $0x88] ss:$16 sps:$4 sm:$0xff]   ;;  %v916_v24 = vld [vmem:[%s1063_s23 + $0xa4] ss:$16 sps:$4 sm:$0xff]  }
  0x18   : > { %612 = vmatprep.subr.bf16.mxu0 %v898_v12  ;;  %653 = vmatprep.subr.bf16.mxu1 %v900_v13  ;;  %v918_v25 = vld [vmem:[%s1063_s23 + $0xac] ss:$16 sps:$4 sm:$0xff]   ;;  %v920_v26 = vld [vmem:[%s1063_s23 + $0xa0] ss:$16 sps:$4 sm:$0xff]   ;;  %v921_v27 = vld [vmem:[%s1063_s23 + $0xa8] ss:$16 sps:$4 sm:$0xff]  }
  0x19   : > { %v922_v28 = vld [vmem:[%s1063_s23 + $0xc4] ss:$16 sps:$4 sm:$0xff]   ;;  %v924_v29 = vld [vmem:[%s1063_s23 + $0xcc] ss:$16 sps:$4 sm:$0xff]   ;;  %v926_v30 = vld [vmem:[%s1063_s23 + $0xc0] ss:$16 sps:$4 sm:$0xff]  }
  0x1a   : > { %v927_v31 = vld [vmem:[%s1063_s23 + $0xc8] ss:$16 sps:$4 sm:$0xff]   ;;  %v928_v32 = vld [vmem:[%s1063_s23 + $0xe4] ss:$16 sps:$4 sm:$0xff]   ;;  %v930_v33 = vld [vmem:[%s1063_s23 + $0xec] ss:$16 sps:$4 sm:$0xff]  }
  0x1b   : > { %613 = vmatpush1.bf16.msra.mxu0 %v902_v14  ;;  %654 = vmatpush1.bf16.msra.mxu1 %v903_v15  ;;  %v932_v34 = vld [vmem:[%s1063_s23 + $0xe0] ss:$16 sps:$4 sm:$0xff]   ;;  %v933_v35 = vld [vmem:[%s1063_s23 + $0xe8] ss:$16 sps:$4 sm:$0xff]   ;;  %v934_v36 = vld [vmem:[%s1063_s23 + $0x104] ss:$16 sps:$4 sm:$0xff]  }
  0x1c   : > { %614 = vmatprep.subr.bf16.mxu0 %v904_v16  ;;  %655 = vmatprep.subr.bf16.mxu1 %v906_v17  ;;  %v936_v37 = vld [vmem:[%s1063_s23 + $0x10c] ss:$16 sps:$4 sm:$0xff]   ;;  %v938_v38 = vld [vmem:[%s1063_s23 + $0x100] ss:$16 sps:$4 sm:$0xff]   ;;  %v939_v39 = vld [vmem:[%s1063_s23 + $0x108] ss:$16 sps:$4 sm:$0xff]  }
  0x1d   : > { %v940_v40 = vld [vmem:[%s1063_s23 + $0x124] ss:$16 sps:$4 sm:$0xff]   ;;  %v942_v41 = vld [vmem:[%s1063_s23 + $0x12c] ss:$16 sps:$4 sm:$0xff]   ;;  %v944_v42 = vld [vmem:[%s1063_s23 + $0x120] ss:$16 sps:$4 sm:$0xff]  }
  0x1e   : > { %v945_v43 = vld [vmem:[%s1063_s23 + $0x128] ss:$16 sps:$4 sm:$0xff]   ;;  %v946_v44 = vld [vmem:[%s1063_s23 + $0x144] ss:$16 sps:$4 sm:$0xff]   ;;  %v948_v45 = vld [vmem:[%s1063_s23 + $0x14c] ss:$16 sps:$4 sm:$0xff]  }
  0x1f   : > { %615 = vmatpush1.bf16.msra.mxu0 %v908_v18  ;;  %656 = vmatpush1.bf16.msra.mxu1 %v909_v19  ;;  %v950_v46 = vld [vmem:[%s1063_s23 + $0x140] ss:$16 sps:$4 sm:$0xff]   ;;  %v951_v47 = vld [vmem:[%s1063_s23 + $0x148] ss:$16 sps:$4 sm:$0xff]   ;;  %v952_v48 = vld [vmem:[%s1063_s23 + $0x164] ss:$16 sps:$4 sm:$0xff]  }
  0x20   : > { %616 = vmatprep.subr.bf16.mxu0 %v910_v20  ;;  %657 = vmatprep.subr.bf16.mxu1 %v912_v21  ;;  %v954_v49 = vld [vmem:[%s1063_s23 + $0x16c] ss:$16 sps:$4 sm:$0xff]   ;;  %v956_v50 = vld [vmem:[%s1063_s23 + $0x160] ss:$16 sps:$4 sm:$0xff]   ;;  %v957_v51 = vld [vmem:[%s1063_s23 + $0x168] ss:$16 sps:$4 sm:$0xff]  }
  0x21   : > { %v958_v52 = vld [vmem:[%s1063_s23 + $0x184] ss:$16 sps:$4 sm:$0xff]   ;;  %v960_v53 = vld [vmem:[%s1063_s23 + $0x18c] ss:$16 sps:$4 sm:$0xff]   ;;  %v962_v54 = vld [vmem:[%s1063_s23 + $0x180] ss:$16 sps:$4 sm:$0xff]  }
  0x22   : > { %v963_v55 = vld [vmem:[%s1063_s23 + $0x188] ss:$16 sps:$4 sm:$0xff]   ;;  %v964_v56 = vld [vmem:[%s1063_s23 + $0x1a4] ss:$16 sps:$4 sm:$0xff]   ;;  %v966_v57 = vld [vmem:[%s1063_s23 + $0x1ac] ss:$16 sps:$4 sm:$0xff]  }
  0x23   : > { %617 = vmatpush1.bf16.msra.mxu0 %v914_v22  ;;  %658 = vmatpush1.bf16.msra.mxu1 %v915_v23  ;;  %v968_v58 = vld [vmem:[%s1063_s23 + $0x1a0] ss:$16 sps:$4 sm:$0xff]   ;;  %v969_v59 = vld [vmem:[%s1063_s23 + $0x1a8] ss:$16 sps:$4 sm:$0xff]   ;;  %v970_v60 = vld [vmem:[%s1063_s23 + $0x1c4] ss:$16 sps:$4 sm:$0xff]  }
  0x24   : > { %618 = vmatprep.subr.bf16.mxu0 %v916_v24  ;;  %659 = vmatprep.subr.bf16.mxu1 %v918_v25  ;;  %v972_v61 = vld [vmem:[%s1063_s23 + $0x1cc] ss:$16 sps:$4 sm:$0xff]   ;;  %v974_v62 = vld [vmem:[%s1063_s23 + $0x1c0] ss:$16 sps:$4 sm:$0xff]   ;;  %v975_v63 = vld [vmem:[%s1063_s23 + $0x1c8] ss:$16 sps:$4 sm:$0xff]  }
  0x25   : > { %v976_v1 = vld [vmem:[%s1063_s23 + $0x1e4] ss:$16 sps:$4 sm:$0xff]   ;;  %v978_v2 = vld [vmem:[%s1063_s23 + $0x1ec] ss:$16 sps:$4 sm:$0xff]   ;;  %v980_v3 = vld [vmem:[%s1063_s23 + $0x1e0] ss:$16 sps:$4 sm:$0xff]  }
  0x26   : > { %v981_v4 = vld [vmem:[%s1063_s23 + $0x1e8] ss:$16 sps:$4 sm:$0xff]  }
  0x27   : > { %619 = vmatpush1.bf16.msra.mxu0 %v920_v26  ;;  %660 = vmatpush1.bf16.msra.mxu1 %v921_v27 }
  0x28   : > { %620 = vmatprep.subr.bf16.mxu0 %v922_v28  ;;  %661 = vmatprep.subr.bf16.mxu1 %v924_v29 }
  0x2b   : > { %621 = vmatpush1.bf16.msra.mxu0 %v926_v30  ;;  %662 = vmatpush1.bf16.msra.mxu1 %v927_v31 }
  0x2c   : > { %622 = vmatprep.subr.bf16.mxu0 %v928_v32  ;;  %663 = vmatprep.subr.bf16.mxu1 %v930_v33 }
  0x2f   : > { %623 = vmatpush1.bf16.msra.mxu0 %v932_v34  ;;  %664 = vmatpush1.bf16.msra.mxu1 %v933_v35 }
  0x30   : > { %624 = vmatprep.subr.bf16.mxu0 %v934_v36  ;;  %665 = vmatprep.subr.bf16.mxu1 %v936_v37 }
  0x33   : > { %625 = vmatpush1.bf16.msra.mxu0 %v938_v38  ;;  %666 = vmatpush1.bf16.msra.mxu1 %v939_v39 }
  0x34   : > { %626 = vmatprep.subr.bf16.mxu0 %v940_v40  ;;  %667 = vmatprep.subr.bf16.mxu1 %v942_v41 }
  0x37   : > { %627 = vmatpush1.bf16.msra.mxu0 %v944_v42  ;;  %668 = vmatpush1.bf16.msra.mxu1 %v945_v43 }
  0x38   : > { %628 = vmatprep.subr.bf16.mxu0 %v946_v44  ;;  %669 = vmatprep.subr.bf16.mxu1 %v948_v45 }
  0x3b   : > { %629 = vmatpush1.bf16.msra.mxu0 %v950_v46  ;;  %670 = vmatpush1.bf16.msra.mxu1 %v951_v47 }
  0x3c   : > { %630 = vmatprep.subr.bf16.mxu0 %v952_v48  ;;  %671 = vmatprep.subr.bf16.mxu1 %v954_v49 }
  0x3f   : > { %631 = vmatpush1.bf16.msra.mxu0 %v956_v50  ;;  %672 = vmatpush1.bf16.msra.mxu1 %v957_v51 }
  0x40   : > { %632 = vmatprep.subr.bf16.mxu0 %v958_v52  ;;  %673 = vmatprep.subr.bf16.mxu1 %v960_v53 }
  0x43   : > { %633 = vmatpush1.bf16.msra.mxu0 %v962_v54  ;;  %674 = vmatpush1.bf16.msra.mxu1 %v963_v55 }
  0x44   : > { %634 = vmatprep.subr.bf16.mxu0 %v964_v56  ;;  %675 = vmatprep.subr.bf16.mxu1 %v966_v57 }
  0x47   : > { %635 = vmatpush1.bf16.msra.mxu0 %v968_v58  ;;  %676 = vmatpush1.bf16.msra.mxu1 %v969_v59 }
  0x48   : > { %636 = vmatprep.subr.bf16.mxu0 %v970_v60  ;;  %677 = vmatprep.subr.bf16.mxu1 %v972_v61 }
  0x4b   : > { %637 = vmatpush1.bf16.msra.mxu0 %v974_v62  ;;  %678 = vmatpush1.bf16.msra.mxu1 %v975_v63 }
  0x4c   : > { %638 = vmatprep.subr.bf16.mxu0 %v976_v1  ;;  %679 = vmatprep.subr.bf16.mxu1 %v978_v2 }
  0x4f   : > { %639 = vmatpush1.bf16.msra.mxu0 %v980_v3  ;;  %680 = vmatpush1.bf16.msra.mxu1 %v981_v4 }
  0x52   : > { %641 = vmatmul.mubr.bf16.vlgmr.msra.gmra.mrb[0].mxu0 %v790_v5  ;;  %682 = vmatmul.mubr.bf16.vlgmr.msra.gmra.mrb[0].mxu1 %v790_v5 }
  0x87   : > { %v279_v6 = vpop.permute.xlu0 %278 }
 0x125   : > { %v642_v7 = vpop.f32.mrb[0].mxu0  ;;  %v683_v8 = vpop.f32.mrb[0].mxu1 }
 0x126   : > { %v643_v9 = vadd.f32 %v642_v7, %v279_v6  ;;  %v684_v10 = vadd.f32 %v683_v8, %v279_v6  ;;  %v644_v11 = vpop.f32.mrb[1].mxu0  ;;  %v685_v12 = vpop.f32.mrb[1].mxu1 }
 0x127   : > { %v645_v13 = vadd.f32 %v644_v11, %v279_v6  ;;  %v686_v14 = vadd.f32 %v685_v12, %v279_v6  ;;  %v646_v15 = vpop.f32.mrb[2].mxu0  ;;  %v687_v0 = vpop.f32.mrb[2].mxu1 }
 0x128   : > { %690 = vst [vmem:[%s208_s27] sm:$0xff] %v643_v9  ;;  %692 = vst [vmem:[%s208_s27 + $0x10] sm:$0xff] %v684_v10  ;;  %v647_v16 = vpop.f32.mrb[3].mxu0  ;;  %v688_v17 = vpop.f32.mrb[3].mxu1 }
 0x129   : > { %691 = vst [vmem:[%s208_s27 + $0x8] sm:$0xff] %v645_v13  ;;  %693 = vst [vmem:[%s208_s27 + $0x18] sm:$0xff] %v686_v14 }
 0x12a PF: > { %s13_s14 = sadd.s32 1, %s1006_s14   ;;  %s1148_s12 = smov %s1002_s13 }
 0x12b   : > { %p10_p5 = scmp.ge.s32.totalorder %s13_s14, 4   ;;  %s1149_s13 = smov %s1151_s15 }
 0x12d   :  { %12 = sbr.rel (!%p10_p5) target bundleno = 2 (0x2), region = 62 }

// kernel: _lambda_.13
= control target key start
LH: loop header
LB: loop body
LE: loop exit
PB: predicated region body
PF: predicated region fallthrough
CT: control target
= control target key end

     0   :  { %s1033_s12 = smov 0   ;;  %s1035_s13 = smov 0   ;;  %s1148_s0 = inlined_call_operand.vmem [shape: bf16[2,256,512], index: 0, kind: input, shape index: {}]   ;;  %s1149_s1 = inlined_call_operand.vmem [shape: bf16[8,256], index: 1, kind: input, shape index: {}]   ;;  %s1150_s2 = inlined_call_operand.vmem [shape: f32[8,1], index: 2, kind: input, shape index: {}]   ;;  %s1151_s3 = inlined_call_operand.vmem [shape: f32[2,8,512], index: 3, kind: output, shape index: {}]  }
   0x1   :  { %s1037_s14 = smov 0  }
   0x2 LB: > { %s25_s15 = sadd.s32 1, %s1006_s13  ;;  %p789_p0 = scmp.ge.s32.totalorder %s1010_s14, 1  ;;  %s1010_s14 = sphi %s1037_s14, %s13_s14   ;;  %s1006_s13 = sphi %s1035_s13, %s1153_s13   ;;  %s1002_s12 = sphi %s1033_s12, %s1152_s12  }
   0x3   : > { %p27_p1 = scmp.ge.s32.totalorder %s25_s15, 2  ;;  %p158_p2 = scmp.lt.s32.totalorder %s1010_s14, 3 }
   0x5   : > { %s1155_s15 = smov (%p27_p1, %s25_s15), 0  ;;  %p159_p3 = pnand %p789_p0, %p158_p2 }
   0x6   : > { %p191_p4 = scmp.lt.s32.totalorder (!%p159_p3), %s1002_s12, 1  ;;  %v1054_v0 = vld [vmem:[%s1149_s1] sm:$0xff] (!%p159_p3)  ;;  %v1012_v3 = vmov (!%p159_p3), 0  }
   0x7   : > { %162 = sbr.rel (%p159_p3) target bundleno = 300 (0x12c), region = 32  ;;  %v275_v1 = vld [vmem:[%s1150_s2] sm:$0xff] (!%p159_p3)  ;;  %v795_v2 = vcombine.high (!%p159_p3), %v1054_v0, %v1054_v0  ;;  %889 = vset.pattern.permute.xlu0 (!%p159_p3), %v1012_v3 }
   0x8   : > { %278 = vperm.xlu0 (!%p159_p3), %889, %v275_v1  }
   0x9   : > { %640 = vmatprep.mubr.bf16.mxu0 (!%p159_p3), %v795_v2  ;;  %681 = vmatprep.mubr.bf16.mxu1 (!%p159_p3), %v795_v2 }
   0xe   : > { %s1157_s12 = smov (!%p191_p4, %s1002_s12), 1 }
   0xf   : > { %s862_s20 = sshll.u32 %s1157_s12, 9  ;;  %s863_s24 = sshll.u32 %s1157_s12, 5 }
  0x10   : > { %s1067_s23 = scalar_lea.vmem %s1148_s0, %s862_s20  ;;  %s208_s27 = scalar_lea.vmem %s1151_s3, %s863_s24 }
  0x11   : > { %v890_v4 = vld [vmem:[%s1067_s23 + $0x4] ss:$16 sps:$4 sm:$0xff]   ;;  %v892_v5 = vld [vmem:[%s1067_s23 + $0xc] ss:$16 sps:$4 sm:$0xff]   ;;  %v894_v6 = vld [vmem:[%s1067_s23] ss:$16 sps:$4 sm:$0xff]  }
  0x12   : > { %608 = vmatprep.subr.bf16.mxu0 %v890_v4  ;;  %v895_v7 = vld [vmem:[%s1067_s23 + $0x8] ss:$16 sps:$4 sm:$0xff]   ;;  %649 = vmatprep.subr.bf16.mxu1 %v892_v5  ;;  %v896_v8 = vld [vmem:[%s1067_s23 + $0x24] ss:$16 sps:$4 sm:$0xff]   ;;  %v898_v9 = vld [vmem:[%s1067_s23 + $0x2c] ss:$16 sps:$4 sm:$0xff]   ;;  %v794_v5 = vcombine.low %v1054_v0, %v1054_v0 }
  0x13   : > { %609 = vmatpush1.bf16.msra.mxu0 %v894_v6  ;;  %650 = vmatpush1.bf16.msra.mxu1 %v895_v7  ;;  %v900_v10 = vld [vmem:[%s1067_s23 + $0x20] ss:$16 sps:$4 sm:$0xff]   ;;  %v901_v11 = vld [vmem:[%s1067_s23 + $0x28] ss:$16 sps:$4 sm:$0xff]   ;;  %v902_v12 = vld [vmem:[%s1067_s23 + $0x44] ss:$16 sps:$4 sm:$0xff]  }
  0x14   : > { %610 = vmatprep.subr.bf16.mxu0 %v896_v8  ;;  %651 = vmatprep.subr.bf16.mxu1 %v898_v9  ;;  %v904_v13 = vld [vmem:[%s1067_s23 + $0x4c] ss:$16 sps:$4 sm:$0xff]   ;;  %v906_v14 = vld [vmem:[%s1067_s23 + $0x40] ss:$16 sps:$4 sm:$0xff]   ;;  %v907_v15 = vld [vmem:[%s1067_s23 + $0x48] ss:$16 sps:$4 sm:$0xff]  }
  0x15   : > { %v908_v16 = vld [vmem:[%s1067_s23 + $0x64] ss:$16 sps:$4 sm:$0xff]   ;;  %v910_v17 = vld [vmem:[%s1067_s23 + $0x6c] ss:$16 sps:$4 sm:$0xff]   ;;  %v912_v18 = vld [vmem:[%s1067_s23 + $0x60] ss:$16 sps:$4 sm:$0xff]  }
  0x16   : > { %v913_v19 = vld [vmem:[%s1067_s23 + $0x68] ss:$16 sps:$4 sm:$0xff]   ;;  %v914_v20 = vld [vmem:[%s1067_s23 + $0x84] ss:$16 sps:$4 sm:$0xff]   ;;  %v916_v21 = vld [vmem:[%s1067_s23 + $0x8c] ss:$16 sps:$4 sm:$0xff]  }
  0x17   : > { %611 = vmatpush1.bf16.msra.mxu0 %v900_v10  ;;  %652 = vmatpush1.bf16.msra.mxu1 %v901_v11  ;;  %v918_v22 = vld [vmem:[%s1067_s23 + $0x80] ss:$16 sps:$4 sm:$0xff]   ;;  %v919_v23 = vld [vmem:[%s1067_s23 + $0x88] ss:$16 sps:$4 sm:$0xff]   ;;  %v920_v24 = vld [vmem:[%s1067_s23 + $0xa4] ss:$16 sps:$4 sm:$0xff]  }
  0x18   : > { %612 = vmatprep.subr.bf16.mxu0 %v902_v12  ;;  %653 = vmatprep.subr.bf16.mxu1 %v904_v13  ;;  %v922_v25 = vld [vmem:[%s1067_s23 + $0xac] ss:$16 sps:$4 sm:$0xff]   ;;  %v924_v26 = vld [vmem:[%s1067_s23 + $0xa0] ss:$16 sps:$4 sm:$0xff]   ;;  %v925_v27 = vld [vmem:[%s1067_s23 + $0xa8] ss:$16 sps:$4 sm:$0xff]  }
  0x19   : > { %v926_v28 = vld [vmem:[%s1067_s23 + $0xc4] ss:$16 sps:$4 sm:$0xff]   ;;  %v928_v29 = vld [vmem:[%s1067_s23 + $0xcc] ss:$16 sps:$4 sm:$0xff]   ;;  %v930_v30 = vld [vmem:[%s1067_s23 + $0xc0] ss:$16 sps:$4 sm:$0xff]  }
  0x1a   : > { %v931_v31 = vld [vmem:[%s1067_s23 + $0xc8] ss:$16 sps:$4 sm:$0xff]   ;;  %v932_v32 = vld [vmem:[%s1067_s23 + $0xe4] ss:$16 sps:$4 sm:$0xff]   ;;  %v934_v33 = vld [vmem:[%s1067_s23 + $0xec] ss:$16 sps:$4 sm:$0xff]  }
  0x1b   : > { %613 = vmatpush1.bf16.msra.mxu0 %v906_v14  ;;  %654 = vmatpush1.bf16.msra.mxu1 %v907_v15  ;;  %v936_v34 = vld [vmem:[%s1067_s23 + $0xe0] ss:$16 sps:$4 sm:$0xff]   ;;  %v937_v35 = vld [vmem:[%s1067_s23 + $0xe8] ss:$16 sps:$4 sm:$0xff]   ;;  %v938_v36 = vld [vmem:[%s1067_s23 + $0x104] ss:$16 sps:$4 sm:$0xff]  }
  0x1c   : > { %614 = vmatprep.subr.bf16.mxu0 %v908_v16  ;;  %655 = vmatprep.subr.bf16.mxu1 %v910_v17  ;;  %v940_v37 = vld [vmem:[%s1067_s23 + $0x10c] ss:$16 sps:$4 sm:$0xff]   ;;  %v942_v38 = vld [vmem:[%s1067_s23 + $0x100] ss:$16 sps:$4 sm:$0xff]   ;;  %v943_v39 = vld [vmem:[%s1067_s23 + $0x108] ss:$16 sps:$4 sm:$0xff]  }
  0x1d   : > { %v944_v40 = vld [vmem:[%s1067_s23 + $0x124] ss:$16 sps:$4 sm:$0xff]   ;;  %v946_v41 = vld [vmem:[%s1067_s23 + $0x12c] ss:$16 sps:$4 sm:$0xff]   ;;  %v948_v42 = vld [vmem:[%s1067_s23 + $0x120] ss:$16 sps:$4 sm:$0xff]  }
  0x1e   : > { %v949_v43 = vld [vmem:[%s1067_s23 + $0x128] ss:$16 sps:$4 sm:$0xff]   ;;  %v950_v44 = vld [vmem:[%s1067_s23 + $0x144] ss:$16 sps:$4 sm:$0xff]   ;;  %v952_v45 = vld [vmem:[%s1067_s23 + $0x14c] ss:$16 sps:$4 sm:$0xff]  }
  0x1f   : > { %615 = vmatpush1.bf16.msra.mxu0 %v912_v18  ;;  %656 = vmatpush1.bf16.msra.mxu1 %v913_v19  ;;  %v954_v46 = vld [vmem:[%s1067_s23 + $0x140] ss:$16 sps:$4 sm:$0xff]   ;;  %v955_v47 = vld [vmem:[%s1067_s23 + $0x148] ss:$16 sps:$4 sm:$0xff]   ;;  %v956_v48 = vld [vmem:[%s1067_s23 + $0x164] ss:$16 sps:$4 sm:$0xff]  }
  0x20   : > { %616 = vmatprep.subr.bf16.mxu0 %v914_v20  ;;  %657 = vmatprep.subr.bf16.mxu1 %v916_v21  ;;  %v958_v49 = vld [vmem:[%s1067_s23 + $0x16c] ss:$16 sps:$4 sm:$0xff]   ;;  %v960_v50 = vld [vmem:[%s1067_s23 + $0x160] ss:$16 sps:$4 sm:$0xff]   ;;  %v961_v51 = vld [vmem:[%s1067_s23 + $0x168] ss:$16 sps:$4 sm:$0xff]  }
  0x21   : > { %v962_v52 = vld [vmem:[%s1067_s23 + $0x184] ss:$16 sps:$4 sm:$0xff]   ;;  %v964_v53 = vld [vmem:[%s1067_s23 + $0x18c] ss:$16 sps:$4 sm:$0xff]   ;;  %v966_v54 = vld [vmem:[%s1067_s23 + $0x180] ss:$16 sps:$4 sm:$0xff]  }
  0x22   : > { %v967_v55 = vld [vmem:[%s1067_s23 + $0x188] ss:$16 sps:$4 sm:$0xff]   ;;  %v968_v56 = vld [vmem:[%s1067_s23 + $0x1a4] ss:$16 sps:$4 sm:$0xff]   ;;  %v970_v57 = vld [vmem:[%s1067_s23 + $0x1ac] ss:$16 sps:$4 sm:$0xff]  }
  0x23   : > { %617 = vmatpush1.bf16.msra.mxu0 %v918_v22  ;;  %658 = vmatpush1.bf16.msra.mxu1 %v919_v23  ;;  %v972_v58 = vld [vmem:[%s1067_s23 + $0x1a0] ss:$16 sps:$4 sm:$0xff]   ;;  %v973_v59 = vld [vmem:[%s1067_s23 + $0x1a8] ss:$16 sps:$4 sm:$0xff]   ;;  %v974_v60 = vld [vmem:[%s1067_s23 + $0x1c4] ss:$16 sps:$4 sm:$0xff]  }
  0x24   : > { %618 = vmatprep.subr.bf16.mxu0 %v920_v24  ;;  %659 = vmatprep.subr.bf16.mxu1 %v922_v25  ;;  %v976_v61 = vld [vmem:[%s1067_s23 + $0x1cc] ss:$16 sps:$4 sm:$0xff]   ;;  %v978_v62 = vld [vmem:[%s1067_s23 + $0x1c0] ss:$16 sps:$4 sm:$0xff]   ;;  %v979_v63 = vld [vmem:[%s1067_s23 + $0x1c8] ss:$16 sps:$4 sm:$0xff]  }
  0x25   : > { %v980_v1 = vld [vmem:[%s1067_s23 + $0x1e4] ss:$16 sps:$4 sm:$0xff]   ;;  %v982_v2 = vld [vmem:[%s1067_s23 + $0x1ec] ss:$16 sps:$4 sm:$0xff]   ;;  %v984_v3 = vld [vmem:[%s1067_s23 + $0x1e0] ss:$16 sps:$4 sm:$0xff]  }
  0x26   : > { %v985_v4 = vld [vmem:[%s1067_s23 + $0x1e8] ss:$16 sps:$4 sm:$0xff]  }
  0x27   : > { %619 = vmatpush1.bf16.msra.mxu0 %v924_v26  ;;  %660 = vmatpush1.bf16.msra.mxu1 %v925_v27 }
  0x28   : > { %620 = vmatprep.subr.bf16.mxu0 %v926_v28  ;;  %661 = vmatprep.subr.bf16.mxu1 %v928_v29 }
  0x2b   : > { %621 = vmatpush1.bf16.msra.mxu0 %v930_v30  ;;  %662 = vmatpush1.bf16.msra.mxu1 %v931_v31 }
  0x2c   : > { %622 = vmatprep.subr.bf16.mxu0 %v932_v32  ;;  %663 = vmatprep.subr.bf16.mxu1 %v934_v33 }
  0x2f   : > { %623 = vmatpush1.bf16.msra.mxu0 %v936_v34  ;;  %664 = vmatpush1.bf16.msra.mxu1 %v937_v35 }
  0x30   : > { %624 = vmatprep.subr.bf16.mxu0 %v938_v36  ;;  %665 = vmatprep.subr.bf16.mxu1 %v940_v37 }
  0x33   : > { %625 = vmatpush1.bf16.msra.mxu0 %v942_v38  ;;  %666 = vmatpush1.bf16.msra.mxu1 %v943_v39 }
  0x34   : > { %626 = vmatprep.subr.bf16.mxu0 %v944_v40  ;;  %667 = vmatprep.subr.bf16.mxu1 %v946_v41 }
  0x37   : > { %627 = vmatpush1.bf16.msra.mxu0 %v948_v42  ;;  %668 = vmatpush1.bf16.msra.mxu1 %v949_v43 }
  0x38   : > { %628 = vmatprep.subr.bf16.mxu0 %v950_v44  ;;  %669 = vmatprep.subr.bf16.mxu1 %v952_v45 }
  0x3b   : > { %629 = vmatpush1.bf16.msra.mxu0 %v954_v46  ;;  %670 = vmatpush1.bf16.msra.mxu1 %v955_v47 }
  0x3c   : > { %630 = vmatprep.subr.bf16.mxu0 %v956_v48  ;;  %671 = vmatprep.subr.bf16.mxu1 %v958_v49 }
  0x3f   : > { %631 = vmatpush1.bf16.msra.mxu0 %v960_v50  ;;  %672 = vmatpush1.bf16.msra.mxu1 %v961_v51 }
  0x40   : > { %632 = vmatprep.subr.bf16.mxu0 %v962_v52  ;;  %673 = vmatprep.subr.bf16.mxu1 %v964_v53 }
  0x43   : > { %633 = vmatpush1.bf16.msra.mxu0 %v966_v54  ;;  %674 = vmatpush1.bf16.msra.mxu1 %v967_v55 }
  0x44   : > { %634 = vmatprep.subr.bf16.mxu0 %v968_v56  ;;  %675 = vmatprep.subr.bf16.mxu1 %v970_v57 }
  0x47   : > { %635 = vmatpush1.bf16.msra.mxu0 %v972_v58  ;;  %676 = vmatpush1.bf16.msra.mxu1 %v973_v59 }
  0x48   : > { %636 = vmatprep.subr.bf16.mxu0 %v974_v60  ;;  %677 = vmatprep.subr.bf16.mxu1 %v976_v61 }
  0x4b   : > { %637 = vmatpush1.bf16.msra.mxu0 %v978_v62  ;;  %678 = vmatpush1.bf16.msra.mxu1 %v979_v63 }
  0x4c   : > { %638 = vmatprep.subr.bf16.mxu0 %v980_v1  ;;  %679 = vmatprep.subr.bf16.mxu1 %v982_v2 }
  0x4f   : > { %639 = vmatpush1.bf16.msra.mxu0 %v984_v3  ;;  %680 = vmatpush1.bf16.msra.mxu1 %v985_v4 }
  0x52   : > { %641 = vmatmul.mubr.bf16.vlgmr.msra.gmra.mrb[0].mxu0 %v794_v5  ;;  %682 = vmatmul.mubr.bf16.vlgmr.msra.gmra.mrb[0].mxu1 %v794_v5 }
  0x87   : > { %v279_v6 = vpop.permute.xlu0 %278 }
 0x125   : > { %v642_v7 = vpop.f32.mrb[0].mxu0  ;;  %v683_v8 = vpop.f32.mrb[0].mxu1 }
 0x126   : > { %v643_v9 = vadd.f32 %v642_v7, %v279_v6  ;;  %v684_v10 = vadd.f32 %v683_v8, %v279_v6  ;;  %v644_v11 = vpop.f32.mrb[1].mxu0  ;;  %v685_v12 = vpop.f32.mrb[1].mxu1 }
 0x127   : > { %v645_v13 = vadd.f32 %v644_v11, %v279_v6  ;;  %v686_v14 = vadd.f32 %v685_v12, %v279_v6  ;;  %v646_v15 = vpop.f32.mrb[2].mxu0  ;;  %v687_v0 = vpop.f32.mrb[2].mxu1 }
 0x128   : > { %v690_v16 = vmax.f32 %v643_v9, 0.0  ;;  %v692_v17 = vmax.f32 %v684_v10, 0.0  ;;  %v647_v18 = vpop.f32.mrb[3].mxu0  ;;  %v688_v19 = vpop.f32.mrb[3].mxu1 }
 0x129   : > { %v691_v20 = vmax.f32 %v645_v13, 0.0  ;;  %v693_v21 = vmax.f32 %v686_v14, 0.0 }
 0x12a   : > { %694 = vst [vmem:[%s208_s27] sm:$0xff] %v690_v16  ;;  %696 = vst [vmem:[%s208_s27 + $0x10] sm:$0xff] %v692_v17 }
 0x12b   : > { %695 = vst [vmem:[%s208_s27 + $0x8] sm:$0xff] %v691_v20  ;;  %697 = vst [vmem:[%s208_s27 + $0x18] sm:$0xff] %v693_v21 }
 0x12c PF: > { %s13_s14 = sadd.s32 1, %s1010_s14   ;;  %s1152_s12 = smov %s1006_s13 }
 0x12d   : > { %p10_p5 = scmp.ge.s32.totalorder %s13_s14, 4   ;;  %s1153_s13 = smov %s1155_s15 }
 0x12f   :  { %12 = sbr.rel (!%p10_p5) target bundleno = 2 (0x2), region = 62 }

// kernel: _lambda_.14
= control target key start
LH: loop header
LB: loop body
LE: loop exit
PB: predicated region body
PF: predicated region fallthrough
CT: control target
= control target key end

     0   :  { %s1683_s12 = smov 0   ;;  %s1685_s13 = smov 0   ;;  %s1871_s0 = inlined_call_operand.vmem [shape: bf16[2,512,512], index: 0, kind: input, shape index: {}]   ;;  %s1872_s1 = inlined_call_operand.vmem [shape: bf16[8,512], index: 1, kind: input, shape index: {}]   ;;  %s1873_s2 = inlined_call_operand.vmem [shape: f32[8,1], index: 2, kind: input, shape index: {}]   ;;  %s1874_s3 = inlined_call_operand.vmem [shape: f32[2,8,512], index: 3, kind: output, shape index: {}]  }
   0x1   :  { %s1687_s14 = smov 0  }
   0x2 LB: > { %s25_s15 = sadd.s32 1, %s1656_s13  ;;  %p1263_p0 = scmp.ge.s32.totalorder %s1660_s14, 1  ;;  %s1660_s14 = sphi %s1687_s14, %s13_s14   ;;  %s1656_s13 = sphi %s1685_s13, %s1876_s13   ;;  %s1652_s12 = sphi %s1683_s12, %s1875_s12  }
   0x3   : > { %p27_p1 = scmp.ge.s32.totalorder %s25_s15, 2  ;;  %p158_p2 = scmp.lt.s32.totalorder %s1660_s14, 3 }
   0x5   : > { %s1878_s15 = smov (%p27_p1, %s25_s15), 0  ;;  %p159_p3 = pnand %p1263_p0, %p158_p2 }
   0x6   : > { %p191_p4 = scmp.lt.s32.totalorder (!%p159_p3), %s1652_s12, 1  ;;  %v1704_v0 = vld [vmem:[%s1872_s1] sm:$0xff] (!%p159_p3)  ;;  %v1662_v10 = vmov (!%p159_p3), 0  }
   0x7   : > { %162 = sbr.rel (%p159_p3) target bundleno = 364 (0x16c), region = 32  ;;  %v1269_v1 = vcombine.high (!%p159_p3), %v1704_v0, %v1704_v0  ;;  %1441 = vset.pattern.permute.xlu0 (!%p159_p3), %v1662_v10 }
   0x9   : > { %1032 = vmatprep.mubr.bf16.mxu0 (!%p159_p3), %v1269_v1  ;;  %1114 = vmatprep.mubr.bf16.mxu1 (!%p159_p3), %v1269_v1 }
   0xe   : > { %s1880_s12 = smov (!%p191_p4, %s1652_s12), 1 }
   0xf   : > { %s1402_s18 = sshll.u32 %s1880_s12, 10  ;;  %s1403_s26 = sshll.u32 %s1880_s12, 5 }
  0x10   : > { %s1714_s21 = scalar_lea.vmem %s1871_s0, %s1402_s18  ;;  %s208_s29 = scalar_lea.vmem %s1874_s3, %s1403_s26 }
  0x11   : > { %v1442_v2 = vld [vmem:[%s1714_s21 + $0x4] ss:$16 sps:$4 sm:$0xff]   ;;  %v1444_v3 = vld [vmem:[%s1714_s21 + $0xc] ss:$16 sps:$4 sm:$0xff]   ;;  %v1446_v4 = vld [vmem:[%s1714_s21] ss:$16 sps:$4 sm:$0xff]  }
  0x12   : > { %1000 = vmatprep.subr.bf16.mxu0 %v1442_v2  ;;  %v1447_v5 = vld [vmem:[%s1714_s21 + $0x8] ss:$16 sps:$4 sm:$0xff]   ;;  %1082 = vmatprep.subr.bf16.mxu1 %v1444_v3  ;;  %v1448_v6 = vld [vmem:[%s1714_s21 + $0x24] ss:$16 sps:$4 sm:$0xff]   ;;  %v1450_v7 = vld [vmem:[%s1714_s21 + $0x2c] ss:$16 sps:$4 sm:$0xff]  }
  0x13   : > { %1001 = vmatpush1.bf16.msra.mxu0 %v1446_v4  ;;  %1083 = vmatpush1.bf16.msra.mxu1 %v1447_v5  ;;  %v1452_v8 = vld [vmem:[%s1714_s21 + $0x20] ss:$16 sps:$4 sm:$0xff]   ;;  %v1453_v9 = vld [vmem:[%s1714_s21 + $0x28] ss:$16 sps:$4 sm:$0xff]   ;;  %v1454_v11 = vld [vmem:[%s1714_s21 + $0x44] ss:$16 sps:$4 sm:$0xff]  }
  0x14   : > { %1002 = vmatprep.subr.bf16.mxu0 %v1448_v6  ;;  %1084 = vmatprep.subr.bf16.mxu1 %v1450_v7  ;;  %v1456_v12 = vld [vmem:[%s1714_s21 + $0x4c] ss:$16 sps:$4 sm:$0xff]   ;;  %v1458_v13 = vld [vmem:[%s1714_s21 + $0x40] ss:$16 sps:$4 sm:$0xff]   ;;  %v1459_v14 = vld [vmem:[%s1714_s21 + $0x48] ss:$16 sps:$4 sm:$0xff]   ;;  %v1268_v7 = vcombine.low %v1704_v0, %v1704_v0 }
  0x15   : > { %v1460_v15 = vld [vmem:[%s1714_s21 + $0x64] ss:$16 sps:$4 sm:$0xff]   ;;  %v1462_v16 = vld [vmem:[%s1714_s21 + $0x6c] ss:$16 sps:$4 sm:$0xff]   ;;  %v1464_v17 = vld [vmem:[%s1714_s21 + $0x60] ss:$16 sps:$4 sm:$0xff]  }
  0x16   : > { %v1465_v18 = vld [vmem:[%s1714_s21 + $0x68] ss:$16 sps:$4 sm:$0xff]   ;;  %v1466_v19 = vld [vmem:[%s1714_s21 + $0x84] ss:$16 sps:$4 sm:$0xff]   ;;  %v1468_v20 = vld [vmem:[%s1714_s21 + $0x8c] ss:$16 sps:$4 sm:$0xff]  }
  0x17   : > { %1003 = vmatpush1.bf16.msra.mxu0 %v1452_v8  ;;  %1085 = vmatpush1.bf16.msra.mxu1 %v1453_v9  ;;  %v1470_v21 = vld [vmem:[%s1714_s21 + $0x80] ss:$16 sps:$4 sm:$0xff]   ;;  %v1471_v22 = vld [vmem:[%s1714_s21 + $0x88] ss:$16 sps:$4 sm:$0xff]   ;;  %v1472_v23 = vld [vmem:[%s1714_s21 + $0xa4] ss:$16 sps:$4 sm:$0xff]  }
  0x18   : > { %1004 = vmatprep.subr.bf16.mxu0 %v1454_v11  ;;  %1086 = vmatprep.subr.bf16.mxu1 %v1456_v12  ;;  %v1474_v24 = vld [vmem:[%s1714_s21 + $0xac] ss:$16 sps:$4 sm:$0xff]   ;;  %v1476_v25 = vld [vmem:[%s1714_s21 + $0xa0] ss:$16 sps:$4 sm:$0xff]   ;;  %v1477_v26 = vld [vmem:[%s1714_s21 + $0xa8] ss:$16 sps:$4 sm:$0xff]  }
  0x19   : > { %v1478_v27 = vld [vmem:[%s1714_s21 + $0xc4] ss:$16 sps:$4 sm:$0xff]   ;;  %v1480_v28 = vld [vmem:[%s1714_s21 + $0xcc] ss:$16 sps:$4 sm:$0xff]   ;;  %v1482_v29 = vld [vmem:[%s1714_s21 + $0xc0] ss:$16 sps:$4 sm:$0xff]  }
  0x1a   : > { %v1483_v30 = vld [vmem:[%s1714_s21 + $0xc8] ss:$16 sps:$4 sm:$0xff]   ;;  %v1484_v31 = vld [vmem:[%s1714_s21 + $0xe4] ss:$16 sps:$4 sm:$0xff]   ;;  %v1486_v32 = vld [vmem:[%s1714_s21 + $0xec] ss:$16 sps:$4 sm:$0xff]  }
  0x1b   : > { %1005 = vmatpush1.bf16.msra.mxu0 %v1458_v13  ;;  %1087 = vmatpush1.bf16.msra.mxu1 %v1459_v14  ;;  %v1488_v33 = vld [vmem:[%s1714_s21 + $0xe0] ss:$16 sps:$4 sm:$0xff]   ;;  %v1489_v34 = vld [vmem:[%s1714_s21 + $0xe8] ss:$16 sps:$4 sm:$0xff]   ;;  %v1490_v35 = vld [vmem:[%s1714_s21 + $0x104] ss:$16 sps:$4 sm:$0xff]  }
  0x1c   : > { %1006 = vmatprep.subr.bf16.mxu0 %v1460_v15  ;;  %1088 = vmatprep.subr.bf16.mxu1 %v1462_v16  ;;  %v1492_v36 = vld [vmem:[%s1714_s21 + $0x10c] ss:$16 sps:$4 sm:$0xff]   ;;  %v1494_v37 = vld [vmem:[%s1714_s21 + $0x100] ss:$16 sps:$4 sm:$0xff]   ;;  %v1495_v38 = vld [vmem:[%s1714_s21 + $0x108] ss:$16 sps:$4 sm:$0xff]  }
  0x1d   : > { %v1496_v39 = vld [vmem:[%s1714_s21 + $0x124] ss:$16 sps:$4 sm:$0xff]   ;;  %v1498_v40 = vld [vmem:[%s1714_s21 + $0x12c] ss:$16 sps:$4 sm:$0xff]   ;;  %v1500_v41 = vld [vmem:[%s1714_s21 + $0x120] ss:$16 sps:$4 sm:$0xff]  }
  0x1e   : > { %v1501_v42 = vld [vmem:[%s1714_s21 + $0x128] ss:$16 sps:$4 sm:$0xff]   ;;  %v1502_v43 = vld [vmem:[%s1714_s21 + $0x144] ss:$16 sps:$4 sm:$0xff]   ;;  %v1504_v44 = vld [vmem:[%s1714_s21 + $0x14c] ss:$16 sps:$4 sm:$0xff]  }
  0x1f   : > { %1007 = vmatpush1.bf16.msra.mxu0 %v1464_v17  ;;  %1089 = vmatpush1.bf16.msra.mxu1 %v1465_v18  ;;  %v1506_v45 = vld [vmem:[%s1714_s21 + $0x140] ss:$16 sps:$4 sm:$0xff]   ;;  %v1507_v46 = vld [vmem:[%s1714_s21 + $0x148] ss:$16 sps:$4 sm:$0xff]   ;;  %v1508_v47 = vld [vmem:[%s1714_s21 + $0x164] ss:$16 sps:$4 sm:$0xff]  }
  0x20   : > { %1008 = vmatprep.subr.bf16.mxu0 %v1466_v19  ;;  %1090 = vmatprep.subr.bf16.mxu1 %v1468_v20  ;;  %v1510_v48 = vld [vmem:[%s1714_s21 + $0x16c] ss:$16 sps:$4 sm:$0xff]   ;;  %v1512_v49 = vld [vmem:[%s1714_s21 + $0x160] ss:$16 sps:$4 sm:$0xff]   ;;  %v1513_v50 = vld [vmem:[%s1714_s21 + $0x168] ss:$16 sps:$4 sm:$0xff]  }
  0x21   : > { %v1514_v51 = vld [vmem:[%s1714_s21 + $0x184] ss:$16 sps:$4 sm:$0xff]   ;;  %v1516_v52 = vld [vmem:[%s1714_s21 + $0x18c] ss:$16 sps:$4 sm:$0xff]   ;;  %v1518_v53 = vld [vmem:[%s1714_s21 + $0x180] ss:$16 sps:$4 sm:$0xff]  }
  0x22   : > { %v1519_v54 = vld [vmem:[%s1714_s21 + $0x188] ss:$16 sps:$4 sm:$0xff]   ;;  %v1520_v55 = vld [vmem:[%s1714_s21 + $0x1a4] ss:$16 sps:$4 sm:$0xff]   ;;  %v1522_v56 = vld [vmem:[%s1714_s21 + $0x1ac] ss:$16 sps:$4 sm:$0xff]  }
  0x23   : > { %1009 = vmatpush1.bf16.msra.mxu0 %v1470_v21  ;;  %1091 = vmatpush1.bf16.msra.mxu1 %v1471_v22  ;;  %v1524_v57 = vld [vmem:[%s1714_s21 + $0x1a0] ss:$16 sps:$4 sm:$0xff]   ;;  %v1525_v58 = vld [vmem:[%s1714_s21 + $0x1a8] ss:$16 sps:$4 sm:$0xff]   ;;  %v1526_v59 = vld [vmem:[%s1714_s21 + $0x1c4] ss:$16 sps:$4 sm:$0xff]  }
  0x24   : > { %1010 = vmatprep.subr.bf16.mxu0 %v1472_v23  ;;  %1092 = vmatprep.subr.bf16.mxu1 %v1474_v24  ;;  %v1528_v60 = vld [vmem:[%s1714_s21 + $0x1cc] ss:$16 sps:$4 sm:$0xff]   ;;  %v1530_v61 = vld [vmem:[%s1714_s21 + $0x1c0] ss:$16 sps:$4 sm:$0xff]   ;;  %v1531_v62 = vld [vmem:[%s1714_s21 + $0x1c8] ss:$16 sps:$4 sm:$0xff]  }
  0x25   : > { %v1532_v63 = vld [vmem:[%s1714_s21 + $0x1e4] ss:$16 sps:$4 sm:$0xff]   ;;  %v1534_v1 = vld [vmem:[%s1714_s21 + $0x1ec] ss:$16 sps:$4 sm:$0xff]   ;;  %v1536_v2 = vld [vmem:[%s1714_s21 + $0x1e0] ss:$16 sps:$4 sm:$0xff]  }
  0x26   : > { %v1537_v3 = vld [vmem:[%s1714_s21 + $0x1e8] ss:$16 sps:$4 sm:$0xff]   ;;  %v1542_v4 = vld [vmem:[%s1714_s21 + $0x204] ss:$16 sps:$4 sm:$0xff]   ;;  %v1545_v5 = vld [vmem:[%s1714_s21 + $0x20c] ss:$16 sps:$4 sm:$0xff]  }
  0x27   : > { %1011 = vmatpush1.bf16.msra.mxu0 %v1476_v25  ;;  %1093 = vmatpush1.bf16.msra.mxu1 %v1477_v26  ;;  %v1785_v6 = vld [vmem:[%s1872_s1 + $0x8] sm:$0xff]  ;;  %v1540_v8 = vld [vmem:[%s1714_s21 + $0x200] ss:$16 sps:$4 sm:$0xff]   ;;  %v1548_v10 = vld [vmem:[%s1714_s21 + $0x224] ss:$16 sps:$4 sm:$0xff]  }
  0x28   : > { %1012 = vmatprep.subr.bf16.mxu0 %v1478_v27  ;;  %1094 = vmatprep.subr.bf16.mxu1 %v1480_v28  ;;  %v1543_v9 = vld [vmem:[%s1714_s21 + $0x208] ss:$16 sps:$4 sm:$0xff]   ;;  %v1551_v11 = vld [vmem:[%s1714_s21 + $0x22c] ss:$16 sps:$4 sm:$0xff]   ;;  %v1271_v12 = vcombine.high %v1785_v6, %v1785_v6  ;;  %v1546_v13 = vld [vmem:[%s1714_s21 + $0x220] ss:$16 sps:$4 sm:$0xff]  }
  0x29   : > { %v1549_v0 = vld [vmem:[%s1714_s21 + $0x228] ss:$16 sps:$4 sm:$0xff]   ;;  %v1554_v14 = vld [vmem:[%s1714_s21 + $0x244] ss:$16 sps:$4 sm:$0xff]   ;;  %v1557_v15 = vld [vmem:[%s1714_s21 + $0x24c] ss:$16 sps:$4 sm:$0xff]  }
  0x2a   : > { %v1552_v16 = vld [vmem:[%s1714_s21 + $0x240] ss:$16 sps:$4 sm:$0xff]   ;;  %v1555_v17 = vld [vmem:[%s1714_s21 + $0x248] ss:$16 sps:$4 sm:$0xff]   ;;  %v1560_v18 = vld [vmem:[%s1714_s21 + $0x264] ss:$16 sps:$4 sm:$0xff]  }
  0x2b   : > { %1013 = vmatpush1.bf16.msra.mxu0 %v1482_v29  ;;  %1095 = vmatpush1.bf16.msra.mxu1 %v1483_v30  ;;  %v1563_v19 = vld [vmem:[%s1714_s21 + $0x26c] ss:$16 sps:$4 sm:$0xff]   ;;  %v1558_v20 = vld [vmem:[%s1714_s21 + $0x260] ss:$16 sps:$4 sm:$0xff]   ;;  %v1561_v21 = vld [vmem:[%s1714_s21 + $0x268] ss:$16 sps:$4 sm:$0xff]  }
  0x2c   : > { %1014 = vmatprep.subr.bf16.mxu0 %v1484_v31  ;;  %1096 = vmatprep.subr.bf16.mxu1 %v1486_v32  ;;  %v1566_v22 = vld [vmem:[%s1714_s21 + $0x284] ss:$16 sps:$4 sm:$0xff]   ;;  %v1569_v23 = vld [vmem:[%s1714_s21 + $0x28c] ss:$16 sps:$4 sm:$0xff]   ;;  %v1564_v24 = vld [vmem:[%s1714_s21 + $0x280] ss:$16 sps:$4 sm:$0xff]  }
  0x2d   : > { %v1567_v25 = vld [vmem:[%s1714_s21 + $0x288] ss:$16 sps:$4 sm:$0xff]   ;;  %v1572_v26 = vld [vmem:[%s1714_s21 + $0x2a4] ss:$16 sps:$4 sm:$0xff]   ;;  %v1575_v27 = vld [vmem:[%s1714_s21 + $0x2ac] ss:$16 sps:$4 sm:$0xff]  }
  0x2e   : > { %v1570_v28 = vld [vmem:[%s1714_s21 + $0x2a0] ss:$16 sps:$4 sm:$0xff]   ;;  %v1573_v29 = vld [vmem:[%s1714_s21 + $0x2a8] ss:$16 sps:$4 sm:$0xff]   ;;  %v1578_v30 = vld [vmem:[%s1714_s21 + $0x2c4] ss:$16 sps:$4 sm:$0xff]  }
  0x2f   : > { %1015 = vmatpush1.bf16.msra.mxu0 %v1488_v33  ;;  %1097 = vmatpush1.bf16.msra.mxu1 %v1489_v34  ;;  %v1581_v31 = vld [vmem:[%s1714_s21 + $0x2cc] ss:$16 sps:$4 sm:$0xff]   ;;  %v340_v32 = vld [vmem:[%s1873_s2] sm:$0xff]  ;;  %v1579_v34 = vld [vmem:[%s1714_s21 + $0x2c8] ss:$16 sps:$4 sm:$0xff]  }
  0x30   : > { %1016 = vmatprep.subr.bf16.mxu0 %v1490_v35  ;;  %1098 = vmatprep.subr.bf16.mxu1 %v1492_v36  ;;  %v1576_v33 = vld [vmem:[%s1714_s21 + $0x2c0] ss:$16 sps:$4 sm:$0xff]   ;;  %v1584_v35 = vld [vmem:[%s1714_s21 + $0x2e4] ss:$16 sps:$4 sm:$0xff]   ;;  %v1587_v36 = vld [vmem:[%s1714_s21 + $0x2ec] ss:$16 sps:$4 sm:$0xff]  }
  0x31   : > { %343 = vperm.xlu0 %1441, %v340_v32  }
  0x33   : > { %1017 = vmatpush1.bf16.msra.mxu0 %v1494_v37  ;;  %1099 = vmatpush1.bf16.msra.mxu1 %v1495_v38  ;;  %v1582_v37 = vld [vmem:[%s1714_s21 + $0x2e0] ss:$16 sps:$4 sm:$0xff]   ;;  %v1585_v38 = vld [vmem:[%s1714_s21 + $0x2e8] ss:$16 sps:$4 sm:$0xff]  }
  0x34   : > { %1018 = vmatprep.subr.bf16.mxu0 %v1496_v39  ;;  %1100 = vmatprep.subr.bf16.mxu1 %v1498_v40  ;;  %v1590_v39 = vld [vmem:[%s1714_s21 + $0x304] ss:$16 sps:$4 sm:$0xff]   ;;  %v1593_v40 = vld [vmem:[%s1714_s21 + $0x30c] ss:$16 sps:$4 sm:$0xff]  }
  0x37   : > { %1019 = vmatpush1.bf16.msra.mxu0 %v1500_v41  ;;  %1101 = vmatpush1.bf16.msra.mxu1 %v1501_v42  ;;  %v1588_v41 = vld [vmem:[%s1714_s21 + $0x300] ss:$16 sps:$4 sm:$0xff]   ;;  %v1591_v42 = vld [vmem:[%s1714_s21 + $0x308] ss:$16 sps:$4 sm:$0xff]  }
  0x38   : > { %1020 = vmatprep.subr.bf16.mxu0 %v1502_v43  ;;  %1102 = vmatprep.subr.bf16.mxu1 %v1504_v44  ;;  %v1596_v43 = vld [vmem:[%s1714_s21 + $0x324] ss:$16 sps:$4 sm:$0xff]   ;;  %v1599_v44 = vld [vmem:[%s1714_s21 + $0x32c] ss:$16 sps:$4 sm:$0xff]  }
  0x3b   : > { %1021 = vmatpush1.bf16.msra.mxu0 %v1506_v45  ;;  %1103 = vmatpush1.bf16.msra.mxu1 %v1507_v46  ;;  %v1594_v45 = vld [vmem:[%s1714_s21 + $0x320] ss:$16 sps:$4 sm:$0xff]   ;;  %v1597_v46 = vld [vmem:[%s1714_s21 + $0x328] ss:$16 sps:$4 sm:$0xff]  }
  0x3c   : > { %1022 = vmatprep.subr.bf16.mxu0 %v1508_v47  ;;  %1104 = vmatprep.subr.bf16.mxu1 %v1510_v48  ;;  %v1602_v47 = vld [vmem:[%s1714_s21 + $0x344] ss:$16 sps:$4 sm:$0xff]   ;;  %v1605_v48 = vld [vmem:[%s1714_s21 + $0x34c] ss:$16 sps:$4 sm:$0xff]  }
  0x3f   : > { %1023 = vmatpush1.bf16.msra.mxu0 %v1512_v49  ;;  %1105 = vmatpush1.bf16.msra.mxu1 %v1513_v50  ;;  %v1600_v49 = vld [vmem:[%s1714_s21 + $0x340] ss:$16 sps:$4 sm:$0xff]   ;;  %v1603_v50 = vld [vmem:[%s1714_s21 + $0x348] ss:$16 sps:$4 sm:$0xff]  }
  0x40   : > { %1024 = vmatprep.subr.bf16.mxu0 %v1514_v51  ;;  %1106 = vmatprep.subr.bf16.mxu1 %v1516_v52  ;;  %v1608_v51 = vld [vmem:[%s1714_s21 + $0x364] ss:$16 sps:$4 sm:$0xff]   ;;  %v1611_v52 = vld [vmem:[%s1714_s21 + $0x36c] ss:$16 sps:$4 sm:$0xff]  }
  0x43   : > { %1025 = vmatpush1.bf16.msra.mxu0 %v1518_v53  ;;  %1107 = vmatpush1.bf16.msra.mxu1 %v1519_v54  ;;  %v1606_v53 = vld [vmem:[%s1714_s21 + $0x360] ss:$16 sps:$4 sm:$0xff]   ;;  %v1609_v54 = vld [vmem:[%s1714_s21 + $0x368] ss:$16 sps:$4 sm:$0xff]  }
  0x44   : > { %1026 = vmatprep.subr.bf16.mxu0 %v1520_v55  ;;  %1108 = vmatprep.subr.bf16.mxu1 %v1522_v56  ;;  %v1614_v55 = vld [vmem:[%s1714_s21 + $0x384] ss:$16 sps:$4 sm:$0xff]   ;;  %v1617_v56 = vld [vmem:[%s1714_s21 + $0x38c] ss:$16 sps:$4 sm:$0xff]  }
  0x47   : > { %1027 = vmatpush1.bf16.msra.mxu0 %v1524_v57  ;;  %1109 = vmatpush1.bf16.msra.mxu1 %v1525_v58  ;;  %v1612_v57 = vld [vmem:[%s1714_s21 + $0x380] ss:$16 sps:$4 sm:$0xff]   ;;  %v1615_v58 = vld [vmem:[%s1714_s21 + $0x388] ss:$16 sps:$4 sm:$0xff]  }
  0x48   : > { %1028 = vmatprep.subr.bf16.mxu0 %v1526_v59  ;;  %1110 = vmatprep.subr.bf16.mxu1 %v1528_v60  ;;  %v1620_v59 = vld [vmem:[%s1714_s21 + $0x3a4] ss:$16 sps:$4 sm:$0xff]   ;;  %v1623_v60 = vld [vmem:[%s1714_s21 + $0x3ac] ss:$16 sps:$4 sm:$0xff]  }
  0x4b   : > { %1029 = vmatpush1.bf16.msra.mxu0 %v1530_v61  ;;  %1111 = vmatpush1.bf16.msra.mxu1 %v1531_v62  ;;  %v1618_v61 = vld [vmem:[%s1714_s21 + $0x3a0] ss:$16 sps:$4 sm:$0xff]   ;;  %v1621_v62 = vld [vmem:[%s1714_s21 + $0x3a8] ss:$16 sps:$4 sm:$0xff]  }
  0x4c   : > { %1030 = vmatprep.subr.bf16.mxu0 %v1532_v63  ;;  %1112 = vmatprep.subr.bf16.mxu1 %v1534_v1  ;;  %v1626_v63 = vld [vmem:[%s1714_s21 + $0x3c4] ss:$16 sps:$4 sm:$0xff]   ;;  %v1629_v1 = vld [vmem:[%s1714_s21 + $0x3cc] ss:$16 sps:$4 sm:$0xff]  }
  0x4f   : > { %1031 = vmatpush1.bf16.msra.mxu0 %v1536_v2  ;;  %1113 = vmatpush1.bf16.msra.mxu1 %v1537_v3  ;;  %v1624_v2 = vld [vmem:[%s1714_s21 + $0x3c0] ss:$16 sps:$4 sm:$0xff]   ;;  %v1627_v3 = vld [vmem:[%s1714_s21 + $0x3c8] ss:$16 sps:$4 sm:$0xff]  }
  0x50   : > { %1041 = vmatprep.subr.bf16.mxu0 %v1542_v4  ;;  %1123 = vmatprep.subr.bf16.mxu1 %v1545_v5  ;;  %v1632_v4 = vld [vmem:[%s1714_s21 + $0x3e4] ss:$16 sps:$4 sm:$0xff]   ;;  %v1635_v5 = vld [vmem:[%s1714_s21 + $0x3ec] ss:$16 sps:$4 sm:$0xff]  }
  0x52   : > { %1033 = vmatmul.mubr.bf16.vlgmr.msra.gmra.mrb[0].mxu0 %v1268_v7  ;;  %1115 = vmatmul.mubr.bf16.vlgmr.msra.gmra.mrb[0].mxu1 %v1268_v7  ;;  %v1630_v7 = vld [vmem:[%s1714_s21 + $0x3e0] ss:$16 sps:$4 sm:$0xff]  }
  0x53   : > { %1042 = vmatpush1.bf16.msra.mxu0 %v1540_v8  ;;  %1124 = vmatpush1.bf16.msra.mxu1 %v1543_v9  ;;  %v1633_v8 = vld [vmem:[%s1714_s21 + $0x3e8] ss:$16 sps:$4 sm:$0xff]   ;;  %v1270_v9 = vcombine.low %v1785_v6, %v1785_v6 }
  0x54   : > { %1043 = vmatprep.subr.bf16.mxu0 %v1548_v10  ;;  %1125 = vmatprep.subr.bf16.mxu1 %v1551_v11 }
  0x55   : > { %1073 = vmatprep.mubr.bf16.mxu0 %v1271_v12  ;;  %1155 = vmatprep.mubr.bf16.mxu1 %v1271_v12 }
  0x57   : > { %1044 = vmatpush1.bf16.msra.mxu0 %v1546_v13  ;;  %1126 = vmatpush1.bf16.msra.mxu1 %v1549_v0 }
  0x58   : > { %1045 = vmatprep.subr.bf16.mxu0 %v1554_v14  ;;  %1127 = vmatprep.subr.bf16.mxu1 %v1557_v15 }
  0x5b   : > { %1046 = vmatpush1.bf16.msra.mxu0 %v1552_v16  ;;  %1128 = vmatpush1.bf16.msra.mxu1 %v1555_v17 }
  0x5c   : > { %1047 = vmatprep.subr.bf16.mxu0 %v1560_v18  ;;  %1129 = vmatprep.subr.bf16.mxu1 %v1563_v19 }
  0x5f   : > { %1048 = vmatpush1.bf16.msra.mxu0 %v1558_v20  ;;  %1130 = vmatpush1.bf16.msra.mxu1 %v1561_v21 }
  0x60   : > { %1049 = vmatprep.subr.bf16.mxu0 %v1566_v22  ;;  %1131 = vmatprep.subr.bf16.mxu1 %v1569_v23 }
  0x63   : > { %1050 = vmatpush1.bf16.msra.mxu0 %v1564_v24  ;;  %1132 = vmatpush1.bf16.msra.mxu1 %v1567_v25 }
  0x64   : > { %1051 = vmatprep.subr.bf16.mxu0 %v1572_v26  ;;  %1133 = vmatprep.subr.bf16.mxu1 %v1575_v27 }
  0x67   : > { %1052 = vmatpush1.bf16.msra.mxu0 %v1570_v28  ;;  %1134 = vmatpush1.bf16.msra.mxu1 %v1573_v29 }
  0x68   : > { %1053 = vmatprep.subr.bf16.mxu0 %v1578_v30  ;;  %1135 = vmatprep.subr.bf16.mxu1 %v1581_v31 }
  0x6b   : > { %1054 = vmatpush1.bf16.msra.mxu0 %v1576_v33  ;;  %1136 = vmatpush1.bf16.msra.mxu1 %v1579_v34 }
  0x6c   : > { %1055 = vmatprep.subr.bf16.mxu0 %v1584_v35  ;;  %1137 = vmatprep.subr.bf16.mxu1 %v1587_v36 }
  0x6f   : > { %1056 = vmatpush1.bf16.msra.mxu0 %v1582_v37  ;;  %1138 = vmatpush1.bf16.msra.mxu1 %v1585_v38 }
  0x70   : > { %1057 = vmatprep.subr.bf16.mxu0 %v1590_v39  ;;  %1139 = vmatprep.subr.bf16.mxu1 %v1593_v40 }
  0x73   : > { %1058 = vmatpush1.bf16.msra.mxu0 %v1588_v41  ;;  %1140 = vmatpush1.bf16.msra.mxu1 %v1591_v42 }
  0x74   : > { %1059 = vmatprep.subr.bf16.mxu0 %v1596_v43  ;;  %1141 = vmatprep.subr.bf16.mxu1 %v1599_v44 }
  0x77   : > { %1060 = vmatpush1.bf16.msra.mxu0 %v1594_v45  ;;  %1142 = vmatpush1.bf16.msra.mxu1 %v1597_v46 }
  0x78   : > { %1061 = vmatprep.subr.bf16.mxu0 %v1602_v47  ;;  %1143 = vmatprep.subr.bf16.mxu1 %v1605_v48 }
  0x7b   : > { %1062 = vmatpush1.bf16.msra.mxu0 %v1600_v49  ;;  %1144 = vmatpush1.bf16.msra.mxu1 %v1603_v50 }
  0x7c   : > { %1063 = vmatprep.subr.bf16.mxu0 %v1608_v51  ;;  %1145 = vmatprep.subr.bf16.mxu1 %v1611_v52 }
  0x7f   : > { %1064 = vmatpush1.bf16.msra.mxu0 %v1606_v53  ;;  %1146 = vmatpush1.bf16.msra.mxu1 %v1609_v54 }
  0x80   : > { %1065 = vmatprep.subr.bf16.mxu0 %v1614_v55  ;;  %1147 = vmatprep.subr.bf16.mxu1 %v1617_v56 }
  0x83   : > { %1066 = vmatpush1.bf16.msra.mxu0 %v1612_v57  ;;  %1148 = vmatpush1.bf16.msra.mxu1 %v1615_v58 }
  0x84   : > { %1067 = vmatprep.subr.bf16.mxu0 %v1620_v59  ;;  %1149 = vmatprep.subr.bf16.mxu1 %v1623_v60 }
  0x87   : > { %1068 = vmatpush1.bf16.msra.mxu0 %v1618_v61  ;;  %1150 = vmatpush1.bf16.msra.mxu1 %v1621_v62 }
  0x88   : > { %1069 = vmatprep.subr.bf16.mxu0 %v1626_v63  ;;  %1151 = vmatprep.subr.bf16.mxu1 %v1629_v1 }
  0x8b   : > { %1070 = vmatpush1.bf16.msra.mxu0 %v1624_v2  ;;  %1152 = vmatpush1.bf16.msra.mxu1 %v1627_v3 }
  0x8c   : > { %1071 = vmatprep.subr.bf16.mxu0 %v1632_v4  ;;  %1153 = vmatprep.subr.bf16.mxu1 %v1635_v5 }
  0x8f   : > { %1072 = vmatpush1.bf16.msra.mxu0 %v1630_v7  ;;  %1154 = vmatpush1.bf16.msra.mxu1 %v1633_v8 }
  0x92   : > { %1074 = vmatmul.mubr.bf16.vlgmr.msra.gmra.mrb[0].mxu0 %v1270_v9  ;;  %1156 = vmatmul.mubr.bf16.vlgmr.msra.gmra.mrb[0].mxu1 %v1270_v9 }
  0xb0   : > { %v344_v10 = vpop.permute.xlu0 %343 }
 0x165   : > { %v1075_v11 = vpop.f32.mrb[0].mxu0  ;;  %v1157_v12 = vpop.f32.mrb[0].mxu1 }
 0x166   : > { %v1404_v13 = vadd.f32 %v1075_v11, %v344_v10  ;;  %v1406_v0 = vadd.f32 %v1157_v12, %v344_v10  ;;  %v1077_v14 = vpop.f32.mrb[1].mxu0  ;;  %v1159_v15 = vpop.f32.mrb[1].mxu1 }
 0x167   : > { %v1405_v16 = vadd.f32 %v1077_v14, %v344_v10  ;;  %v1407_v17 = vadd.f32 %v1159_v15, %v344_v10  ;;  %v1079_v18 = vpop.f32.mrb[2].mxu0  ;;  %v1161_v6 = vpop.f32.mrb[2].mxu1 }
 0x168   : > { %v1164_v19 = vmax.f32 %v1404_v13, 0.0  ;;  %v1166_v20 = vmax.f32 %v1406_v0, 0.0  ;;  %v1080_v21 = vpop.f32.mrb[3].mxu0  ;;  %v1162_v22 = vpop.f32.mrb[3].mxu1 }
 0x169   : > { %v1165_v23 = vmax.f32 %v1405_v16, 0.0  ;;  %v1167_v24 = vmax.f32 %v1407_v17, 0.0 }
 0x16a   : > { %1168 = vst [vmem:[%s208_s29] sm:$0xff] %v1164_v19  ;;  %1170 = vst [vmem:[%s208_s29 + $0x10] sm:$0xff] %v1166_v20 }
 0x16b   : > { %1169 = vst [vmem:[%s208_s29 + $0x8] sm:$0xff] %v1165_v23  ;;  %1171 = vst [vmem:[%s208_s29 + $0x18] sm:$0xff] %v1167_v24 }
 0x16c PF: > { %s13_s14 = sadd.s32 1, %s1660_s14   ;;  %s1875_s12 = smov %s1656_s13 }
 0x16d   : > { %p10_p5 = scmp.ge.s32.totalorder %s13_s14, 4   ;;  %s1876_s13 = smov %s1878_s15 }
 0x16f   :  { %12 = sbr.rel (!%p10_p5) target bundleno = 2 (0x2), region = 62 }

// kernel: _lambda_.19
= control target key start
LH: loop header
LB: loop body
LE: loop exit
PB: predicated region body
PF: predicated region fallthrough
CT: control target
= control target key end

     0   :  { %s515_s12 = smov 0   ;;  %s517_s13 = smov 0   ;;  %s554_s0 = inlined_call_operand.vmem [shape: bf16[2,16,512], index: 0, kind: input, shape index: {}]   ;;  %s555_s1 = inlined_call_operand.vmem [shape: bf16[8,16], index: 1, kind: input, shape index: {}]   ;;  %s556_s2 = inlined_call_operand.vmem [shape: f32[8,1], index: 2, kind: input, shape index: {}]   ;;  %s557_s3 = inlined_call_operand.vmem [shape: f32[2,8,512], index: 3, kind: output, shape index: {}]  }
   0x1   :  { %s519_s14 = smov 0  }
   0x2 LB: > { %s25_s15 = sadd.s32 1, %s488_s13  ;;  %p423_p0 = scmp.ge.s32.totalorder %s492_s14, 1  ;;  %s492_s14 = sphi %s519_s14, %s13_s14   ;;  %s488_s13 = sphi %s517_s13, %s559_s13   ;;  %s484_s12 = sphi %s515_s12, %s558_s12  }
   0x3   : > { %p27_p1 = scmp.ge.s32.totalorder %s25_s15, 2  ;;  %p158_p2 = scmp.lt.s32.totalorder %s492_s14, 3 }
   0x5   : > { %s561_s15 = smov (%p27_p1, %s25_s15), 0  ;;  %p159_p3 = pnand %p423_p0, %p158_p2 }
   0x6   : > { %p191_p4 = scmp.lt.s32.totalorder (!%p159_p3), %s484_s12, 1  ;;  %v216_v0 = vld [vmem:[%s556_s2] sm:$0xff] (!%p159_p3)  ;;  %v494_v1 = vmov (!%p159_p3), 0   ;;  %vm242_vm0 = vcmask (!%p159_p3), 130048  }
   0x7   : > { %162 = sbr.rel (%p159_p3) target bundleno = 238 (0xee), region = 32  ;;  %278 = vmatprep.mubr.bf16.mxu0 (!%p159_p3), %v494_v1  ;;  %319 = vmatprep.mubr.bf16.mxu1 (!%p159_p3), %v494_v1  ;;  %v211_v6 = vld [vmem:[%s555_s1] sm:$0xf] (!%p159_p3) }
   0x8   : > { %463 = vset.pattern.permute.xlu0 (!%p159_p3), %v494_v1 }
   0x9   : > { %219 = vperm.xlu0 (!%p159_p3), %463, %v216_v0  }
   0xe   : > { %s563_s12 = smov (!%p191_p4, %s484_s12), 1 }
   0xf   : > { %s436_s18 = sshll.u32 %s563_s12, 5 }
  0x10   : > { %s198_s21 = scalar_lea.vmem %s554_s0, %s436_s18  ;;  %s208_s26 = scalar_lea.vmem %s557_s3, %s436_s18 }
  0x11   : > { %v464_v2 = vld [vmem:[%s198_s21 + $0x4] ss:$16 sps:$4 sm:$0xff]   ;;  %v466_v3 = vld [vmem:[%s198_s21 + $0xc] ss:$16 sps:$4 sm:$0xff]   ;;  %v468_v4 = vld [vmem:[%s198_s21] ss:$16 sps:$4 sm:$0xff]  }
  0x12   : > { %246 = vmatprep.subr.bf16.mxu0 %v464_v2  ;;  %v469_v5 = vld [vmem:[%s198_s21 + $0x8] ss:$16 sps:$4 sm:$0xff]   ;;  %287 = vmatprep.subr.bf16.mxu1 %v466_v3 }
  0x13   : > { %247 = vmatpush1.bf16.msra.mxu0 %v468_v4  ;;  %288 = vmatpush1.bf16.msra.mxu1 %v469_v5 }
  0x16   : > { %432 = vmatmul.mubr.msk.bf16.vlgmr.msra.gmra.mrb[0].mxu0 %vm242_vm0, %v211_v6  ;;  %433 = vmatmul.mubr.msk.bf16.vlgmr.msra.gmra.mrb[0].mxu1 %vm242_vm0, %v211_v6 }
  0x88   : > { %v220_v7 = vpop.permute.xlu0 %219 }
  0xe9   : > { %v280_v8 = vpop.f32.mrb[0].mxu0  ;;  %v321_v9 = vpop.f32.mrb[0].mxu1 }
  0xea   : > { %v281_v10 = vadd.f32 %v280_v8, %v220_v7  ;;  %v322_v11 = vadd.f32 %v321_v9, %v220_v7  ;;  %v282_v12 = vpop.f32.mrb[1].mxu0  ;;  %v323_v13 = vpop.f32.mrb[1].mxu1 }
  0xeb   : > { %v283_v14 = vadd.f32 %v282_v12, %v220_v7  ;;  %v324_v15 = vadd.f32 %v323_v13, %v220_v7  ;;  %v284_v16 = vpop.f32.mrb[2].mxu0  ;;  %v325_v17 = vpop.f32.mrb[2].mxu1 }
  0xec   : > { %328 = vst [vmem:[%s208_s26] sm:$0xff] %v281_v10  ;;  %330 = vst [vmem:[%s208_s26 + $0x10] sm:$0xff] %v322_v11  ;;  %v285_v18 = vpop.f32.mrb[3].mxu0  ;;  %v326_v19 = vpop.f32.mrb[3].mxu1 }
  0xed   : > { %329 = vst [vmem:[%s208_s26 + $0x8] sm:$0xff] %v283_v14  ;;  %331 = vst [vmem:[%s208_s26 + $0x18] sm:$0xff] %v324_v15 }
  0xee PF: > { %s13_s14 = sadd.s32 1, %s492_s14   ;;  %s558_s12 = smov %s488_s13 }
  0xef   : > { %p10_p5 = scmp.ge.s32.totalorder %s13_s14, 4   ;;  %s559_s13 = smov %s561_s15 }
  0xf1   :  { %12 = sbr.rel (!%p10_p5) target bundleno = 2 (0x2), region = 62 }

// kernel: _lambda_.21
= control target key start
LH: loop header
LB: loop body
LE: loop exit
PB: predicated region body
PF: predicated region fallthrough
CT: control target
= control target key end

     0   :  { %s1048_s12 = smov 0   ;;  %s1050_s13 = smov 0   ;;  %s1163_s0 = inlined_call_operand.vmem [shape: bf16[2,256,512], index: 0, kind: input, shape index: {}]   ;;  %s1164_s1 = inlined_call_operand.vmem [shape: bf16[16,256], index: 1, kind: input, shape index: {}]   ;;  %s1165_s2 = inlined_call_operand.vmem [shape: f32[16,1], index: 2, kind: input, shape index: {}]   ;;  %s1166_s3 = inlined_call_operand.vmem [shape: f32[2,16,512], index: 3, kind: output, shape index: {}]  }
   0x1   :  { %s1052_s14 = smov 0  }
   0x2 LB: > { %s25_s15 = sadd.s32 1, %s1021_s13  ;;  %p803_p0 = scmp.ge.s32.totalorder %s1025_s14, 1  ;;  %s1025_s14 = sphi %s1052_s14, %s13_s14   ;;  %s1021_s13 = sphi %s1050_s13, %s1168_s13   ;;  %s1017_s12 = sphi %s1048_s12, %s1167_s12  }
   0x3   : > { %p27_p1 = scmp.ge.s32.totalorder %s25_s15, 2  ;;  %p158_p2 = scmp.lt.s32.totalorder %s1025_s14, 3 }
   0x5   : > { %s1170_s15 = smov (%p27_p1, %s25_s15), 0  ;;  %p159_p3 = pnand %p803_p0, %p158_p2 }
   0x6   : > { %p191_p4 = scmp.lt.s32.totalorder (!%p159_p3), %s1017_s12, 1  ;;  %v1002_v0 = vld [vmem:[%s1164_s1 + $0x4] ss:$8 sps:$4 sm:$0xff] (!%p159_p3)   ;;  %v1027_v1 = vmov (!%p159_p3), 0  }
   0x7   : > { %162 = sbr.rel (%p159_p3) target bundleno = 300 (0x12c), region = 32  ;;  %903 = vset.pattern.permute.xlu0 (!%p159_p3), %v1027_v1  ;;  %v276_v2 = vld [vmem:[%s1165_s2] sm:$0xff] (!%p159_p3)  ;;  %650 = vmatprep.mubr.bf16.mxu0 (!%p159_p3), %v1002_v0  ;;  %v277_v3 = vld [vmem:[%s1165_s2 + $0x8] sm:$0xff] (!%p159_p3) }
   0x8   : > { %280 = vperm.xlu0 (!%p159_p3), %903, %v276_v2   ;;  %693 = vmatprep.mubr.bf16.mxu1 (!%p159_p3), %v1002_v0 }
   0xc   : > { %285 = vperm.xlu0 (!%p159_p3), %903, %v277_v3  }
   0xe   : > { %s1172_s12 = smov (!%p191_p4, %s1017_s12), 1 }
   0xf   : > { %s876_s22 = sshll.u32 %s1172_s12, 9  ;;  %s877_s28 = sshll.u32 %s1172_s12, 6 }
  0x10   : > { %s1081_s25 = scalar_lea.vmem %s1163_s0, %s876_s22  ;;  %s208_s4 = scalar_lea.vmem %s1166_s3, %s877_s28 }
  0x11   : > { %v904_v4 = vld [vmem:[%s1081_s25 + $0x4] ss:$16 sps:$4 sm:$0xff]   ;;  %v906_v5 = vld [vmem:[%s1081_s25 + $0xc] ss:$16 sps:$4 sm:$0xff]   ;;  %v908_v6 = vld [vmem:[%s1081_s25] ss:$16 sps:$4 sm:$0xff]  }
  0x12   : > { %618 = vmatprep.subr.bf16.mxu0 %v904_v4  ;;  %v909_v7 = vld [vmem:[%s1081_s25 + $0x8] ss:$16 sps:$4 sm:$0xff]   ;;  %661 = vmatprep.subr.bf16.mxu1 %v906_v5  ;;  %v910_v8 = vld [vmem:[%s1081_s25 + $0x24] ss:$16 sps:$4 sm:$0xff]   ;;  %v912_v9 = vld [vmem:[%s1081_s25 + $0x2c] ss:$16 sps:$4 sm:$0xff]  }
  0x13   : > { %619 = vmatpush1.bf16.msra.mxu0 %v908_v6  ;;  %662 = vmatpush1.bf16.msra.mxu1 %v909_v7  ;;  %v914_v10 = vld [vmem:[%s1081_s25 + $0x20] ss:$16 sps:$4 sm:$0xff]   ;;  %v915_v11 = vld [vmem:[%s1081_s25 + $0x28] ss:$16 sps:$4 sm:$0xff]   ;;  %v916_v12 = vld [vmem:[%s1081_s25 + $0x44] ss:$16 sps:$4 sm:$0xff]  }
  0x14   : > { %620 = vmatprep.subr.bf16.mxu0 %v910_v8  ;;  %663 = vmatprep.subr.bf16.mxu1 %v912_v9  ;;  %v918_v13 = vld [vmem:[%s1081_s25 + $0x4c] ss:$16 sps:$4 sm:$0xff]   ;;  %v920_v14 = vld [vmem:[%s1081_s25 + $0x40] ss:$16 sps:$4 sm:$0xff]   ;;  %v921_v15 = vld [vmem:[%s1081_s25 + $0x48] ss:$16 sps:$4 sm:$0xff]  }
  0x15   : > { %v922_v16 = vld [vmem:[%s1081_s25 + $0x64] ss:$16 sps:$4 sm:$0xff]   ;;  %v924_v17 = vld [vmem:[%s1081_s25 + $0x6c] ss:$16 sps:$4 sm:$0xff]   ;;  %v926_v18 = vld [vmem:[%s1081_s25 + $0x60] ss:$16 sps:$4 sm:$0xff]  }
  0x16   : > { %v927_v19 = vld [vmem:[%s1081_s25 + $0x68] ss:$16 sps:$4 sm:$0xff]   ;;  %v928_v20 = vld [vmem:[%s1081_s25 + $0x84] ss:$16 sps:$4 sm:$0xff]   ;;  %v930_v21 = vld [vmem:[%s1081_s25 + $0x8c] ss:$16 sps:$4 sm:$0xff]  }
  0x17   : > { %621 = vmatpush1.bf16.msra.mxu0 %v914_v10  ;;  %664 = vmatpush1.bf16.msra.mxu1 %v915_v11  ;;  %v932_v22 = vld [vmem:[%s1081_s25 + $0x80] ss:$16 sps:$4 sm:$0xff]   ;;  %v933_v23 = vld [vmem:[%s1081_s25 + $0x88] ss:$16 sps:$4 sm:$0xff]   ;;  %v934_v24 = vld [vmem:[%s1081_s25 + $0xa4] ss:$16 sps:$4 sm:$0xff]  }
  0x18   : > { %622 = vmatprep.subr.bf16.mxu0 %v916_v12  ;;  %665 = vmatprep.subr.bf16.mxu1 %v918_v13  ;;  %v936_v25 = vld [vmem:[%s1081_s25 + $0xac] ss:$16 sps:$4 sm:$0xff]   ;;  %v938_v26 = vld [vmem:[%s1081_s25 + $0xa0] ss:$16 sps:$4 sm:$0xff]   ;;  %v939_v27 = vld [vmem:[%s1081_s25 + $0xa8] ss:$16 sps:$4 sm:$0xff]  }
  0x19   : > { %v940_v28 = vld [vmem:[%s1081_s25 + $0xc4] ss:$16 sps:$4 sm:$0xff]   ;;  %v942_v29 = vld [vmem:[%s1081_s25 + $0xcc] ss:$16 sps:$4 sm:$0xff]   ;;  %v944_v30 = vld [vmem:[%s1081_s25 + $0xc0] ss:$16 sps:$4 sm:$0xff]  }
  0x1a   : > { %v945_v31 = vld [vmem:[%s1081_s25 + $0xc8] ss:$16 sps:$4 sm:$0xff]   ;;  %v946_v32 = vld [vmem:[%s1081_s25 + $0xe4] ss:$16 sps:$4 sm:$0xff]   ;;  %v948_v33 = vld [vmem:[%s1081_s25 + $0xec] ss:$16 sps:$4 sm:$0xff]  }
  0x1b   : > { %623 = vmatpush1.bf16.msra.mxu0 %v920_v14  ;;  %666 = vmatpush1.bf16.msra.mxu1 %v921_v15  ;;  %v950_v34 = vld [vmem:[%s1081_s25 + $0xe0] ss:$16 sps:$4 sm:$0xff]   ;;  %v951_v35 = vld [vmem:[%s1081_s25 + $0xe8] ss:$16 sps:$4 sm:$0xff]   ;;  %v952_v36 = vld [vmem:[%s1081_s25 + $0x104] ss:$16 sps:$4 sm:$0xff]  }
  0x1c   : > { %624 = vmatprep.subr.bf16.mxu0 %v922_v16  ;;  %667 = vmatprep.subr.bf16.mxu1 %v924_v17  ;;  %v954_v37 = vld [vmem:[%s1081_s25 + $0x10c] ss:$16 sps:$4 sm:$0xff]   ;;  %v956_v38 = vld [vmem:[%s1081_s25 + $0x100] ss:$16 sps:$4 sm:$0xff]   ;;  %v957_v39 = vld [vmem:[%s1081_s25 + $0x108] ss:$16 sps:$4 sm:$0xff]  }
  0x1d   : > { %v958_v40 = vld [vmem:[%s1081_s25 + $0x124] ss:$16 sps:$4 sm:$0xff]   ;;  %v960_v41 = vld [vmem:[%s1081_s25 + $0x12c] ss:$16 sps:$4 sm:$0xff]   ;;  %v962_v42 = vld [vmem:[%s1081_s25 + $0x120] ss:$16 sps:$4 sm:$0xff]  }
  0x1e   : > { %v963_v43 = vld [vmem:[%s1081_s25 + $0x128] ss:$16 sps:$4 sm:$0xff]   ;;  %v964_v44 = vld [vmem:[%s1081_s25 + $0x144] ss:$16 sps:$4 sm:$0xff]   ;;  %v966_v45 = vld [vmem:[%s1081_s25 + $0x14c] ss:$16 sps:$4 sm:$0xff]  }
  0x1f   : > { %625 = vmatpush1.bf16.msra.mxu0 %v926_v18  ;;  %668 = vmatpush1.bf16.msra.mxu1 %v927_v19  ;;  %v968_v46 = vld [vmem:[%s1081_s25 + $0x140] ss:$16 sps:$4 sm:$0xff]   ;;  %v969_v47 = vld [vmem:[%s1081_s25 + $0x148] ss:$16 sps:$4 sm:$0xff]   ;;  %v970_v48 = vld [vmem:[%s1081_s25 + $0x164] ss:$16 sps:$4 sm:$0xff]  }
  0x20   : > { %626 = vmatprep.subr.bf16.mxu0 %v928_v20  ;;  %669 = vmatprep.subr.bf16.mxu1 %v930_v21  ;;  %v972_v49 = vld [vmem:[%s1081_s25 + $0x16c] ss:$16 sps:$4 sm:$0xff]   ;;  %v974_v50 = vld [vmem:[%s1081_s25 + $0x160] ss:$16 sps:$4 sm:$0xff]   ;;  %v975_v51 = vld [vmem:[%s1081_s25 + $0x168] ss:$16 sps:$4 sm:$0xff]  }
  0x21   : > { %v976_v52 = vld [vmem:[%s1081_s25 + $0x184] ss:$16 sps:$4 sm:$0xff]   ;;  %v978_v53 = vld [vmem:[%s1081_s25 + $0x18c] ss:$16 sps:$4 sm:$0xff]   ;;  %v980_v54 = vld [vmem:[%s1081_s25 + $0x180] ss:$16 sps:$4 sm:$0xff]  }
  0x22   : > { %v981_v55 = vld [vmem:[%s1081_s25 + $0x188] ss:$16 sps:$4 sm:$0xff]   ;;  %v982_v56 = vld [vmem:[%s1081_s25 + $0x1a4] ss:$16 sps:$4 sm:$0xff]   ;;  %v984_v57 = vld [vmem:[%s1081_s25 + $0x1ac] ss:$16 sps:$4 sm:$0xff]  }
  0x23   : > { %627 = vmatpush1.bf16.msra.mxu0 %v932_v22  ;;  %670 = vmatpush1.bf16.msra.mxu1 %v933_v23  ;;  %v986_v58 = vld [vmem:[%s1081_s25 + $0x1a0] ss:$16 sps:$4 sm:$0xff]   ;;  %v987_v59 = vld [vmem:[%s1081_s25 + $0x1a8] ss:$16 sps:$4 sm:$0xff]   ;;  %v988_v60 = vld [vmem:[%s1081_s25 + $0x1c4] ss:$16 sps:$4 sm:$0xff]  }
  0x24   : > { %628 = vmatprep.subr.bf16.mxu0 %v934_v24  ;;  %671 = vmatprep.subr.bf16.mxu1 %v936_v25  ;;  %v990_v61 = vld [vmem:[%s1081_s25 + $0x1cc] ss:$16 sps:$4 sm:$0xff]   ;;  %v992_v62 = vld [vmem:[%s1081_s25 + $0x1c0] ss:$16 sps:$4 sm:$0xff]   ;;  %v993_v63 = vld [vmem:[%s1081_s25 + $0x1c8] ss:$16 sps:$4 sm:$0xff]  }
  0x25   : > { %v994_v0 = vld [vmem:[%s1081_s25 + $0x1e4] ss:$16 sps:$4 sm:$0xff]   ;;  %v996_v1 = vld [vmem:[%s1081_s25 + $0x1ec] ss:$16 sps:$4 sm:$0xff]   ;;  %v998_v2 = vld [vmem:[%s1081_s25 + $0x1e0] ss:$16 sps:$4 sm:$0xff]  }
  0x26   : > { %v999_v3 = vld [vmem:[%s1081_s25 + $0x1e8] ss:$16 sps:$4 sm:$0xff]  }
  0x27   : > { %629 = vmatpush1.bf16.msra.mxu0 %v938_v26  ;;  %672 = vmatpush1.bf16.msra.mxu1 %v939_v27  ;;  %v1000_v4 = vld [vmem:[%s1164_s1] ss:$8 sps:$4 sm:$0xff]  }
  0x28   : > { %630 = vmatprep.subr.bf16.mxu0 %v940_v28  ;;  %673 = vmatprep.subr.bf16.mxu1 %v942_v29 }
  0x2b   : > { %631 = vmatpush1.bf16.msra.mxu0 %v944_v30  ;;  %674 = vmatpush1.bf16.msra.mxu1 %v945_v31 }
  0x2c   : > { %632 = vmatprep.subr.bf16.mxu0 %v946_v32  ;;  %675 = vmatprep.subr.bf16.mxu1 %v948_v33 }
  0x2f   : > { %633 = vmatpush1.bf16.msra.mxu0 %v950_v34  ;;  %676 = vmatpush1.bf16.msra.mxu1 %v951_v35 }
  0x30   : > { %634 = vmatprep.subr.bf16.mxu0 %v952_v36  ;;  %677 = vmatprep.subr.bf16.mxu1 %v954_v37 }
  0x33   : > { %635 = vmatpush1.bf16.msra.mxu0 %v956_v38  ;;  %678 = vmatpush1.bf16.msra.mxu1 %v957_v39 }
  0x34   : > { %636 = vmatprep.subr.bf16.mxu0 %v958_v40  ;;  %679 = vmatprep.subr.bf16.mxu1 %v960_v41 }
  0x37   : > { %637 = vmatpush1.bf16.msra.mxu0 %v962_v42  ;;  %680 = vmatpush1.bf16.msra.mxu1 %v963_v43 }
  0x38   : > { %638 = vmatprep.subr.bf16.mxu0 %v964_v44  ;;  %681 = vmatprep.subr.bf16.mxu1 %v966_v45 }
  0x3b   : > { %639 = vmatpush1.bf16.msra.mxu0 %v968_v46  ;;  %682 = vmatpush1.bf16.msra.mxu1 %v969_v47 }
  0x3c   : > { %640 = vmatprep.subr.bf16.mxu0 %v970_v48  ;;  %683 = vmatprep.subr.bf16.mxu1 %v972_v49 }
  0x3f   : > { %641 = vmatpush1.bf16.msra.mxu0 %v974_v50  ;;  %684 = vmatpush1.bf16.msra.mxu1 %v975_v51 }
  0x40   : > { %642 = vmatprep.subr.bf16.mxu0 %v976_v52  ;;  %685 = vmatprep.subr.bf16.mxu1 %v978_v53 }
  0x43   : > { %643 = vmatpush1.bf16.msra.mxu0 %v980_v54  ;;  %686 = vmatpush1.bf16.msra.mxu1 %v981_v55 }
  0x44   : > { %644 = vmatprep.subr.bf16.mxu0 %v982_v56  ;;  %687 = vmatprep.subr.bf16.mxu1 %v984_v57 }
  0x47   : > { %645 = vmatpush1.bf16.msra.mxu0 %v986_v58  ;;  %688 = vmatpush1.bf16.msra.mxu1 %v987_v59 }
  0x48   : > { %646 = vmatprep.subr.bf16.mxu0 %v988_v60  ;;  %689 = vmatprep.subr.bf16.mxu1 %v990_v61 }
  0x4b   : > { %647 = vmatpush1.bf16.msra.mxu0 %v992_v62  ;;  %690 = vmatpush1.bf16.msra.mxu1 %v993_v63 }
  0x4c   : > { %648 = vmatprep.subr.bf16.mxu0 %v994_v0  ;;  %691 = vmatprep.subr.bf16.mxu1 %v996_v1 }
  0x4f   : > { %649 = vmatpush1.bf16.msra.mxu0 %v998_v2  ;;  %692 = vmatpush1.bf16.msra.mxu1 %v999_v3 }
  0x52   : > { %651 = vmatmul.mubr.bf16.vlgmr.msra.gmra.mrb[0].mxu0 %v1000_v4  ;;  %694 = vmatmul.mubr.bf16.vlgmr.msra.gmra.mrb[0].mxu1 %v1000_v4 }
  0x87   : > { %v281_v5 = vpop.permute.xlu0 %280 }
  0x8b   : > { %v286_v6 = vpop.permute.xlu0 %285 }
 0x125   : > { %v652_v7 = vpop.f32.mrb[0].mxu0  ;;  %v695_v8 = vpop.f32.mrb[0].mxu1 }
 0x126   : > { %v653_v9 = vadd.f32 %v652_v7, %v281_v5  ;;  %v696_v10 = vadd.f32 %v695_v8, %v281_v5  ;;  %v654_v11 = vpop.f32.mrb[1].mxu0  ;;  %v697_v12 = vpop.f32.mrb[1].mxu1 }
 0x127   : > { %v655_v13 = vadd.f32 %v654_v11, %v281_v5  ;;  %v698_v14 = vadd.f32 %v697_v12, %v281_v5  ;;  %v656_v15 = vpop.f32.mrb[2].mxu0  ;;  %v699_v16 = vpop.f32.mrb[2].mxu1 }
 0x128   : > { %704 = vst [vmem:[%s208_s4] sm:$0xff] %v653_v9  ;;  %706 = vst [vmem:[%s208_s4 + $0x10] sm:$0xff] %v696_v10  ;;  %v657_v17 = vadd.f32 %v656_v15, %v286_v6  ;;  %v700_v18 = vadd.f32 %v699_v16, %v286_v6  ;;  %v658_v19 = vpop.f32.mrb[3].mxu0  ;;  %v701_v20 = vpop.f32.mrb[3].mxu1 }
 0x129   : > { %705 = vst [vmem:[%s208_s4 + $0x8] sm:$0xff] %v655_v13  ;;  %707 = vst [vmem:[%s208_s4 + $0x18] sm:$0xff] %v698_v14  ;;  %v659_v21 = vadd.f32 %v658_v19, %v286_v6  ;;  %v702_v22 = vadd.f32 %v701_v20, %v286_v6 }
 0x12a   : > { %708 = vst [vmem:[%s208_s4 + $0x20] sm:$0xff] %v657_v17  ;;  %710 = vst [vmem:[%s208_s4 + $0x30] sm:$0xff] %v700_v18 }
 0x12b   : > { %709 = vst [vmem:[%s208_s4 + $0x28] sm:$0xff] %v659_v21  ;;  %711 = vst [vmem:[%s208_s4 + $0x38] sm:$0xff] %v702_v22 }
 0x12c PF: > { %s13_s14 = sadd.s32 1, %s1025_s14   ;;  %s1167_s12 = smov %s1021_s13 }
 0x12d   : > { %p10_p5 = scmp.ge.s32.totalorder %s13_s14, 4   ;;  %s1168_s13 = smov %s1170_s15 }
 0x12f   :  { %12 = sbr.rel (!%p10_p5) target bundleno = 2 (0x2), region = 62 }

</bundles_post_ra>
